<compile_context>
chip_gen: v6e
topology: v6e:2x2x1
jax: 0.10.0
libtpu: 0.0.40
codegen_flags: <defaults>
</compile_context>

<pallas_src>
from functools import partial, lru_cache

import numpy as np
import jax
import jax.numpy as jnp
from jax.experimental import pallas as pl
from jax.experimental.pallas import tpu as pltpu


def _ru(x, m):
    return (x + m - 1) // m * m


def _cdiv(a, b):
    return -(-a // b)


# ---------------------------------------------------------------------------
# Generation-aware VMEM budget (v7x: 64 MiB, v5e/v6e: 128 MiB)
# ---------------------------------------------------------------------------
def _vmem_capacity_bytes():
    try:
        return int(pltpu.get_tpu_info().vmem_capacity_bytes)
    except Exception:
        return 64 * 1024 * 1024        # conservative fallback


_VMEM_CAP = _vmem_capacity_bytes()
_VMEM_LIMIT = max(min(int(_VMEM_CAP * 0.75), 100 * 1024 * 1024), 32 * 1024 * 1024)
_GEMM_BUDGET_BYTES = int(_VMEM_LIMIT * 0.55)   # double-buffered per-step working set
_ROWCONV_MAX_W_BYTES = 8 * 1024 * 1024         # weight must stay VMEM-resident


# ---------------------------------------------------------------------------
# GEMM (+ bias + optional ReLU) Pallas kernels; bf16 operands, f32 accumulate
# ---------------------------------------------------------------------------
def _mm_kernel_single(a_ref, b_ref, bias_ref, o_ref, *, relu):
    r = jnp.dot(a_ref[...], b_ref[...], preferred_element_type=jnp.float32)
    r = r + bias_ref[...]
    if relu:
        r = jnp.maximum(r, 0.0)
    o_ref[...] = r.astype(o_ref.dtype)


def _mm_kernel_multi(a_ref, b_ref, bias_ref, o_ref, acc_ref, *, relu):
    @pl.when(pl.program_id(2) == 0)
    def _():
        acc_ref[...] = jnp.zeros_like(acc_ref)

    acc_ref[...] += jnp.dot(a_ref[...], b_ref[...],
                            preferred_element_type=jnp.float32)

    @pl.when(pl.program_id(2) == pl.num_programs(2) - 1)
    def _():
        r = acc_ref[...] + bias_ref[...]
        if relu:
            r = jnp.maximum(r, 0.0)
        o_ref[...] = r.astype(o_ref.dtype)


def _pick_tiles(M, K, N, budget=_GEMM_BUDGET_BYTES):
    """Pick (tm, tk, tn) so the bf16 double-buffered working set
    (4*tm*tk + 4*tk*tn + 12*tm*tn bytes) stays under `budget`; tiles are
    rounded to 16 sublanes (bf16 packing) / 128 lanes, K/N chunks are balanced,
    and single-block grids are split so a v7x second TensorCore gets work."""
    Mp0, Kp0, Np0 = _ru(M, 16), _ru(K, 128), _ru(N, 128)
    tn = min(Np0, 512)
    tk = min(Kp0, 4096)
    rem = budget - 4 * tk * tn
    if rem >= (4 * tk + 12 * tn) * 16:
        tm = min(Mp0, 2048, max(16, rem // (4 * tk + 12 * tn) // 16 * 16))
    else:
        tm = min(Mp0, 256)
        tk_b = (budget - 12 * tm * tn) // (4 * (tm + tn))
        tk = min(Kp0, max(128, tk_b // 128 * 128))
    # Re-balance so per-axis padding waste is below one tile.
    tm = _ru(_cdiv(Mp0, _cdiv(Mp0, tm)), 16)
    tk = _ru(_cdiv(Kp0, _cdiv(Kp0, tk)), 128)
    tn = _ru(_cdiv(Np0, _cdiv(Np0, tn)), 128)
    # Guarantee >=2 blocks on a parallel axis when possible (v7x megacore).
    if _cdiv(Mp0, tm) == 1 and _cdiv(Np0, tn) == 1:
        if Mp0 >= 32:
            tm = _ru(_cdiv(Mp0, 2), 16)
        elif Np0 >= 256:
            tn = _ru(_cdiv(Np0, 2), 128)
    return tm, tk, tn


@lru_cache(maxsize=None)
def _matmul_call(Mp, Kp, Np, tm, tk, tn, relu, out_dtype_str):
    out_dtype = jnp.dtype(out_dtype_str)
    nk = Kp // tk
    if nk == 1:
        # Single K chunk: no scratch accumulator, no zero-init pass.
        kernel = partial(_mm_kernel_single, relu=relu)
        grid = (Mp // tm, Np // tn)
        in_specs = [pl.BlockSpec((tm, tk), lambda i, j: (i, 0)),
                    pl.BlockSpec((tk, tn), lambda i, j: (0, j)),
                    pl.BlockSpec((1, tn), lambda i, j: (0, j))]
        out_specs = pl.BlockSpec((tm, tn), lambda i, j: (i, j))
        scratch = []
        sem = ("parallel", "parallel")
    else:
        kernel = partial(_mm_kernel_multi, relu=relu)
        grid = (Mp // tm, Np // tn, nk)
        in_specs = [pl.BlockSpec((tm, tk), lambda i, j, k: (i, k)),
                    pl.BlockSpec((tk, tn), lambda i, j, k: (k, j)),
                    pl.BlockSpec((1, tn), lambda i, j, k: (0, j))]
        out_specs = pl.BlockSpec((tm, tn), lambda i, j, k: (i, j))
        scratch = [pltpu.VMEM((tm, tn), jnp.float32)]
        sem = ("parallel", "parallel", "arbitrary")
    return pl.pallas_call(
        kernel,
        out_shape=jax.ShapeDtypeStruct((Mp, Np), out_dtype),
        grid_spec=pltpu.PrefetchScalarGridSpec(
            num_scalar_prefetch=0, grid=grid,
            in_specs=in_specs, out_specs=out_specs, scratch_shapes=scratch),
        compiler_params=pltpu.CompilerParams(
            dimension_semantics=sem, vmem_limit_bytes=_VMEM_LIMIT),
    )


def matmul_bias(a, b, bias, relu=False, out_dtype=jnp.float32):
    """a:(M,K) @ b:(K,N) + bias:(N,), optional fused ReLU.  Operands are cast
    to bf16 (MXU native), accumulation stays f32."""
    M, K = a.shape
    K2, N = b.shape
    assert K == K2
    a = a.astype(jnp.bfloat16)
    b = b.astype(jnp.bfloat16)
    tm, tk, tn = _pick_tiles(M, K, N)
    Mp, Kp, Np = _ru(M, tm), _ru(K, tk), _ru(N, tn)
    # TODO(synk): handle the M/N remainders with in-kernel masked stores instead
    # of these HBM pad / slice round-trips.
    if (M, K) != (Mp, Kp):
        a = jnp.pad(a, ((0, Mp - M), (0, Kp - K)))
    if (K, N) != (Kp, Np):
        b = jnp.pad(b, ((0, Kp - K), (0, Np - N)))
    bias2 = bias.astype(jnp.float32).reshape(1, N)
    if Np != N:
        bias2 = jnp.pad(bias2, ((0, 0), (0, Np - N)))
    out = _matmul_call(Mp, Kp, Np, tm, tk, tn, bool(relu),
                       str(jnp.dtype(out_dtype)))(a, b, bias2)
    if (Mp, Np) != (M, N):
        out = out[:M, :N]
    return out


# ---------------------------------------------------------------------------
# Row-wise 3x3 conv kernel: no HBM im2col, weight resident in VMEM
# ---------------------------------------------------------------------------
@lru_cache(maxsize=None)
def _row_conv_call(B, Hp, Wp, Cin, Cout, kh, kw, relu, out_dtype_str):
    out_dtype = jnp.dtype(out_dtype_str)
    Ho, Wo = Hp - kh + 1, Wp - kw + 1

    def kernel(*refs):
        x_refs = refs[:kh]
        w_ref, b_ref, o_ref = refs[kh], refs[kh + 1], refs[kh + 2]
        acc = None
        for dy in range(kh):
            for dx in range(kw):
                a = x_refs[dy][0, 0, dx:dx + Wo, :]            # (Wo, Cin) bf16
                d = jnp.dot(a, w_ref[dy, dx],
                            preferred_element_type=jnp.float32)
                acc = d if acc is None else acc + d
        r = acc + b_ref[...]
        if relu:
            r = jnp.maximum(r, 0.0)
        o_ref[0, 0] = r.astype(o_ref.dtype)

    # The same padded activation is passed kh times; each ref's row-block size
    # is 1, so the index_map shift (+dy) is an exact element offset.
    in_specs = [pl.BlockSpec((1, 1, Wp, Cin),
                             (lambda b, y, dy=dy: (b, y + dy, 0, 0)))
                for dy in range(kh)]
    in_specs.append(pl.BlockSpec((kh, kw, Cin, Cout), lambda b, y: (0, 0, 0, 0)))
    in_specs.append(pl.BlockSpec((1, Cout), lambda b, y: (0, 0)))

    return pl.pallas_call(
        kernel,
        out_shape=jax.ShapeDtypeStruct((B, Ho, Wo, Cout), out_dtype),
        grid_spec=pltpu.PrefetchScalarGridSpec(
            num_scalar_prefetch=0, grid=(B, Ho),
            in_specs=in_specs,
            out_specs=pl.BlockSpec((1, 1, Wo, Cout), lambda b, y: (b, y, 0, 0))),
        compiler_params=pltpu.CompilerParams(
            dimension_semantics=("parallel", "parallel"),
            vmem_limit_bytes=_VMEM_LIMIT),
    )


def _conv2d_rows(x, w, b, padding, relu, out_dtype):
    B, H, W, C = x.shape
    Cout, Cin, kh, kw = w.shape
    assert C == Cin
    if padding:
        x = jnp.pad(x, ((0, 0), (padding, padding), (padding, padding), (0, 0)))
    Hp, Wp = H + 2 * padding, W + 2 * padding
    wq = jnp.transpose(w, (2, 3, 1, 0)).astype(jnp.bfloat16)   # (kh,kw,Cin,Cout)
    bq = b.reshape(1, Cout).astype(jnp.float32)
    xq = x.astype(jnp.bfloat16)
    call = _row_conv_call(B, Hp, Wp, Cin, Cout, kh, kw, bool(relu),
                          str(jnp.dtype(out_dtype)))
    return call(*([xq] * kh), wq, bq)


def _conv2d_im2col(x, w, b, padding, relu, out_dtype):
    """Fallback for convs whose weight cannot stay VMEM-resident (fc6)."""
    B, H, W, C = x.shape
    Cout, Cin, kh, kw = w.shape
    assert C == Cin
    if padding:
        x = jnp.pad(x, ((0, 0), (padding, padding), (padding, padding), (0, 0)))
    Hp, Wp = H + 2 * padding, W + 2 * padding
    Ho, Wo = Hp - kh + 1, Wp - kw + 1
    cols = [x[:, dy:dy + Ho, dx:dx + Wo, :]
            for dy in range(kh) for dx in range(kw)]
    a = jnp.stack(cols, axis=3).reshape(B * Ho * Wo, kh * kw * Cin)
    wm = w.transpose(2, 3, 1, 0).reshape(kh * kw * Cin, Cout)
    out = matmul_bias(a, wm, b, relu=relu, out_dtype=out_dtype)
    return out.reshape(B, Ho, Wo, Cout)


def conv2d(x, w, b, padding=0, relu=False, out_dtype=jnp.bfloat16):
    """nn.Conv2d (stride 1) on NHWC activations."""
    Cout, Cin, kh, kw = w.shape
    if kh == 1 and kw == 1:
        B, H, W, C = x.shape
        assert C == Cin and padding == 0
        a = x.reshape(B * H * W, C)
        out = matmul_bias(a, w.reshape(Cout, Cin).T, b, relu=relu,
                          out_dtype=out_dtype)
        return out.reshape(B, H, W, Cout)
    if kh * kw * Cin * Cout * 2 <= _ROWCONV_MAX_W_BYTES:
        return _conv2d_rows(x, w, b, padding, relu, out_dtype)
    # TODO(synk): fc6 (7x7, K=25088) still uses an im2col GEMM because its
    # weight does not fit VMEM; a K-chunked shifted-window variant would remove
    # the (small) patch materialization here too.
    return _conv2d_im2col(x, w, b, padding, relu, out_dtype)


# ---------------------------------------------------------------------------
# MaxPool2d(2, stride=2, ceil_mode=True) on NHWC — single HBM read
# ---------------------------------------------------------------------------
@lru_cache(maxsize=None)
def _pool_call(Mp, rt, Wo, C, dtype_str):
    dtype = jnp.dtype(dtype_str)

    def kernel(x_ref, o_ref):
        v = jnp.maximum(x_ref[:, 0, :, :], x_ref[:, 1, :, :])   # (rt, Wo, 2C)
        o_ref[...] = jnp.maximum(v[:, :, :C], v[:, :, C:])

    return pl.pallas_call(
        kernel,
        out_shape=jax.ShapeDtypeStruct((Mp, Wo, C), dtype),
        grid_spec=pltpu.PrefetchScalarGridSpec(
            num_scalar_prefetch=0, grid=(Mp // rt,),
            in_specs=[pl.BlockSpec((rt, 2, Wo, 2 * C), lambda i: (i, 0, 0, 0))],
            out_specs=pl.BlockSpec((rt, Wo, C), lambda i: (i, 0, 0))),
        compiler_params=pltpu.CompilerParams(
            dimension_semantics=("parallel",),
            vmem_limit_bytes=_VMEM_LIMIT),
    )


def maxpool2x2_ceil(x):
    """Ceil-mode 2x2/stride-2 max pool on NHWC.  The (B,2Ho,2Wo,C) tensor is
    viewed (contiguously, no copy) as (B*Ho, 2, Wo, 2C) and reduced in VMEM."""
    B, H, W, C = x.shape
    Ho, Wo = _cdiv(H, 2), _cdiv(W, 2)
    if (H, W) != (2 * Ho, 2 * Wo):
        x = jnp.pad(x, ((0, 0), (0, 2 * Ho - H), (0, 2 * Wo - W), (0, 0)),
                    constant_values=float(jnp.finfo(x.dtype).min))
    M2 = B * Ho
    xr = x.reshape(M2, 2, Wo, 2 * C)
    bytes_per_row = 2 * Wo * 2 * C * x.dtype.itemsize
    rt = max(1, min(M2, (6 * 1024 * 1024) // max(1, bytes_per_row)))
    nb = _cdiv(M2, rt)
    rt = _cdiv(M2, nb)
    Mp = nb * rt
    if Mp != M2:
        xr = jnp.pad(xr, ((0, Mp - M2), (0, 0), (0, 0), (0, 0)))
    out = _pool_call(Mp, rt, Wo, C, str(x.dtype))(xr)
    if Mp != M2:
        out = out[:M2]
    return out.reshape(B, Ho, Wo, C)


# ---------------------------------------------------------------------------
# ConvTranspose2d with the module's bilinear init — separable, two GEMMs
# ---------------------------------------------------------------------------
def conv_transpose2d_bilinear(x, w, stride):
    """Exact evaluation of ConvTranspose2d(C, C, k, stride, bias=False) for the
    module's channel-diagonal, separable bilinear weights: one H-interpolation
    GEMM followed by one W-interpolation GEMM (both lane-dense)."""
    # TODO(synk): a trained / non-separable ConvTranspose2d weight would need
    # the generic dilate+conv path; FCN8sAtOnce only uses the bilinear init.
    B, H, W, C = x.shape
    Cin, Cout, k, k2 = w.shape
    assert Cin == C and Cout == C and k == k2
    factor = (k + 1) // 2
    center = factor - 1 if k % 2 == 1 else factor - 0.5
    f1 = (1 - np.abs(np.arange(k) - center) / factor).astype(np.float32)

    def interp(n_in):
        n_out = (n_in - 1) * stride + k
        d = np.arange(n_out)[:, None] - stride * np.arange(n_in)[None, :]
        m = np.where((d >= 0) & (d < k), f1[np.clip(d, 0, k - 1)], 0.0)
        return jnp.asarray(m, jnp.float32)                     # (n_out, n_in)

    My, Mx = interp(H), interp(W)
    Hout, Wout = My.shape[0], Mx.shape[0]
    # H pass: (Hout, H) @ (H, B*W*C)
    t = matmul_bias(My, x.transpose(1, 0, 2, 3).reshape(H, B * W * C),
                    jnp.zeros((B * W * C,), jnp.float32))
    # W pass: (B*Hout*C, W) @ (W, Wout)   -- large spatial dim on lanes
    t = t.reshape(Hout, B, W, C).transpose(1, 0, 3, 2).reshape(B * Hout * C, W)
    t = matmul_bias(t, Mx.T, jnp.zeros((Wout,), jnp.float32))
    return t.reshape(B, Hout, C, Wout).transpose(0, 1, 3, 2)   # (B,Hout,Wout,C)


# ---------------------------------------------------------------------------
# Parameters
# ---------------------------------------------------------------------------
def get_upsampling_weight(in_ch, out_ch, k):
    factor = (k + 1) // 2
    center = factor - 1 if k % 2 == 1 else factor - 0.5
    og = np.ogrid[:k, :k]
    filt = ((1 - abs(og[0] - center) / factor) *
            (1 - abs(og[1] - center) / factor)).astype(np.float32)
    w = np.zeros((in_ch, out_ch, k, k), np.float32)
    w[range(in_ch), range(out_ch), :, :] = filt
    return jnp.asarray(w)


_CONV_SPECS = [
    ("conv1_1", (64, 3, 3, 3)), ("conv1_2", (64, 64, 3, 3)),
    ("conv2_1", (128, 64, 3, 3)), ("conv2_2", (128, 128, 3, 3)),
    ("conv3_1", (256, 128, 3, 3)), ("conv3_2", (256, 256, 3, 3)),
    ("conv3_3", (256, 256, 3, 3)),
    ("conv4_1", (512, 256, 3, 3)), ("conv4_2", (512, 512, 3, 3)),
    ("conv4_3", (512, 512, 3, 3)),
    ("conv5_1", (512, 512, 3, 3)), ("conv5_2", (512, 512, 3, 3)),
    ("conv5_3", (512, 512, 3, 3)),
    ("fc6", (4096, 512, 7, 7)), ("fc7", (4096, 4096, 1, 1)),
    ("score_fr", (21, 4096, 1, 1)), ("score_pool3", (21, 256, 1, 1)),
    ("score_pool4", (21, 512, 1, 1)),
]


def init_params(key, n_class=21):
    # NOTE: the PyTorch module zero-inits every Conv2d (output would be
    # trivially all-zero); we use small deterministic He-scaled random weights
    # so the kernels are numerically exercised.  The ConvTranspose2d layers
    # keep the module's exact bilinear-upsampling initialization.
    params = {}
    keys = jax.random.split(key, len(_CONV_SPECS))
    for k_, (name, shape) in zip(keys, _CONV_SPECS):
        fan_in = shape[1] * shape[2] * shape[3]
        params[name + "_w"] = (jax.random.normal(k_, shape, jnp.float32)
                               * np.sqrt(2.0 / fan_in)).astype(jnp.float32)
        params[name + "_b"] = jnp.zeros((shape[0],), jnp.float32)
    params["upscore2_w"] = get_upsampling_weight(n_class, n_class, 4)
    params["upscore_pool4_w"] = get_upsampling_weight(n_class, n_class, 4)
    params["upscore8_w"] = get_upsampling_weight(n_class, n_class, 16)
    return params


# ---------------------------------------------------------------------------
# FCN8sAtOnce forward (NCHW in / NCHW out, NHWC + bf16 internally)
# ---------------------------------------------------------------------------
def fcn8s_at_once_forward(x_nchw, p):
    x = x_nchw.transpose(0, 2, 3, 1).astype(jnp.bfloat16)      # NHWC bf16
    # ---- stage1 ----
    h = conv2d(x, p["conv1_1_w"], p["conv1_1_b"], padding=100, relu=True)
    h = conv2d(h, p["conv1_2_w"], p["conv1_2_b"], padding=1, relu=True)
    h = maxpool2x2_ceil(h)
    h = conv2d(h, p["conv2_1_w"], p["conv2_1_b"], padding=1, relu=True)
    h = conv2d(h, p["conv2_2_w"], p["conv2_2_b"], padding=1, relu=True)
    h = maxpool2x2_ceil(h)
    h = conv2d(h, p["conv3_1_w"], p["conv3_1_b"], padding=1, relu=True)
    h = conv2d(h, p["conv3_2_w"], p["conv3_2_b"], padding=1, relu=True)
    h = conv2d(h, p["conv3_3_w"], p["conv3_3_b"], padding=1, relu=True)
    pool3 = maxpool2x2_ceil(h)
    # ---- stage2 ----
    h = conv2d(pool3, p["conv4_1_w"], p["conv4_1_b"], padding=1, relu=True)
    h = conv2d(h, p["conv4_2_w"], p["conv4_2_b"], padding=1, relu=True)
    h = conv2d(h, p["conv4_3_w"], p["conv4_3_b"], padding=1, relu=True)
    pool4 = maxpool2x2_ceil(h)
    # ---- stage3 ----
    h = conv2d(pool4, p["conv5_1_w"], p["conv5_1_b"], padding=1, relu=True)
    h = conv2d(h, p["conv5_2_w"], p["conv5_2_b"], padding=1, relu=True)
    h = conv2d(h, p["conv5_3_w"], p["conv5_3_b"], padding=1, relu=True)
    h = maxpool2x2_ceil(h)
    h = conv2d(h, p["fc6_w"], p["fc6_b"], padding=0, relu=True)
    # TODO(synk): Dropout2d (drop6/drop7) is identity at eval time; omitted.
    fc7 = conv2d(h, p["fc7_w"], p["fc7_b"], padding=0, relu=True)
    # ---- fuse_score ----
    h = conv2d(fc7, p["score_fr_w"], p["score_fr_b"], out_dtype=jnp.float32)
    upscore2 = conv_transpose2d_bilinear(h, p["upscore2_w"], stride=2)
    # Skip scales folded into the (tiny) 1x1 weights instead of the activations.
    h = conv2d(pool4, p["score_pool4_w"] * 0.01, p["score_pool4_b"],
               out_dtype=jnp.float32)
    score_pool4c = h[:, 5:5 + upscore2.shape[1], 5:5 + upscore2.shape[2], :]
    h = upscore2 + score_pool4c
    upscore_pool4 = conv_transpose2d_bilinear(h, p["upscore_pool4_w"], stride=2)
    h = conv2d(pool3, p["score_pool3_w"] * 0.0001, p["score_pool3_b"],
               out_dtype=jnp.float32)
    score_pool3c = h[:, 9:9 + upscore_pool4.shape[1],
                     9:9 + upscore_pool4.shape[2], :]
    h = upscore_pool4 + score_pool3c
    h = conv_transpose2d_bilinear(h, p["upscore8_w"], stride=8)
    h = h[:, 31:31 + x_nchw.shape[2], 31:31 + x_nchw.shape[3], :]
    return h.transpose(0, 3, 1, 2).astype(jnp.float32)          # back to NCHW


if __name__ == "__main__":
    n_class = 21
    key = jax.random.PRNGKey(0)
    pkey, xkey = jax.random.split(key)
    params = init_params(pkey, n_class=n_class)
    x = jax.random.normal(xkey, (1, 3, 16, 16), jnp.float32)

    out = fcn8s_at_once_forward(x, params)
    out = jax.block_until_ready(out)

    assert out.shape == (1, n_class, 16, 16), out.shape
    assert bool(jnp.isfinite(out).all())
    print("KERNEL_OK")
</pallas_src>

<mosaic_0001>
module attributes {stable_mosaic.version = 11 : i64} {
  func.func @kernel(%arg0: i32, %arg1: i32, %arg2: memref<1x1x216x3xbf16, #tpu.memory_space<vmem>>, %arg3: memref<1x1x216x3xbf16, #tpu.memory_space<vmem>>, %arg4: memref<1x1x216x3xbf16, #tpu.memory_space<vmem>>, %arg5: memref<3x3x3x64xbf16, #tpu.memory_space<vmem>>, %arg6: memref<1x64xf32, #tpu.memory_space<vmem>>, %arg7: memref<1x1x214x64xbf16, #tpu.memory_space<vmem>>) attributes {dimension_semantics = [#tpu.dimension_semantics<parallel>, #tpu.dimension_semantics<parallel>], iteration_bounds = array<i64: 1, 214>, scalar_prefetch = 0 : i64, scratch_operands = 0 : i64, tpu.core_type = #tpu.core_type<tc>, window_params = [{transform_indices = @transform_0, window_bounds = array<i64: 1, 1, 216, 3>}, {transform_indices = @transform_1, window_bounds = array<i64: 1, 1, 216, 3>}, {transform_indices = @transform_2, window_bounds = array<i64: 1, 1, 216, 3>}, {pipeline_mode = #tpu.pipeline_mode<synchronous>, transform_indices = @transform_3, window_bounds = array<i64: 3, 3, 3, 64>}, {pipeline_mode = #tpu.pipeline_mode<synchronous>, transform_indices = @transform_4, window_bounds = array<i64: 1, 64>}, {transform_indices = @transform_5, window_bounds = array<i64: 1, 1, 214, 64>}]} {
    %c0 = arith.constant 0 : index
    %c0_0 = arith.constant 0 : index
    %c0_1 = arith.constant 0 : index
    %c0_2 = arith.constant 0 : index
    %0 = vector.load %arg2[%c0, %c0_0, %c0_1, %c0_2] : memref<1x1x216x3xbf16, #tpu.memory_space<vmem>>, vector<1x1x214x3xbf16>
    %1 = vector.shape_cast %0 : vector<1x1x214x3xbf16> to vector<214x3xbf16>
    %c0_3 = arith.constant 0 : index
    %c0_4 = arith.constant 0 : index
    %c0_5 = arith.constant 0 : index
    %c0_6 = arith.constant 0 : index
    %2 = vector.load %arg5[%c0_3, %c0_4, %c0_5, %c0_6] : memref<3x3x3x64xbf16, #tpu.memory_space<vmem>>, vector<1x1x3x64xbf16>
    %3 = vector.shape_cast %2 : vector<1x1x3x64xbf16> to vector<3x64xbf16>
    %cst = arith.constant dense<0.000000e+00> : vector<214x64xf32>
    %4 = tpu.matmul %1, %3, %cst {dimension_numbers = #tpu.dot_dimension_numbers<[1], [0], [0], [1], [0, 0, 1, 1], [], []>} : vector<214x3xbf16>, vector<3x64xbf16>, vector<214x64xf32> -> vector<214x64xf32>
    %c0_7 = arith.constant 0 : index
    %c0_8 = arith.constant 0 : index
    %c1 = arith.constant 1 : index
    %c0_9 = arith.constant 0 : index
    %5 = vector.load %arg2[%c0_7, %c0_8, %c1, %c0_9] : memref<1x1x216x3xbf16, #tpu.memory_space<vmem>>, vector<1x1x214x3xbf16>
    %6 = vector.shape_cast %5 : vector<1x1x214x3xbf16> to vector<214x3xbf16>
    %c0_10 = arith.constant 0 : index
    %c1_11 = arith.constant 1 : index
    %c0_12 = arith.constant 0 : index
    %c0_13 = arith.constant 0 : index
    %7 = vector.load %arg5[%c0_10, %c1_11, %c0_12, %c0_13] : memref<3x3x3x64xbf16, #tpu.memory_space<vmem>>, vector<1x1x3x64xbf16>
    %8 = vector.shape_cast %7 : vector<1x1x3x64xbf16> to vector<3x64xbf16>
    %cst_14 = arith.constant dense<0.000000e+00> : vector<214x64xf32>
    %9 = tpu.matmul %6, %8, %cst_14 {dimension_numbers = #tpu.dot_dimension_numbers<[1], [0], [0], [1], [0, 0, 1, 1], [], []>} : vector<214x3xbf16>, vector<3x64xbf16>, vector<214x64xf32> -> vector<214x64xf32>
    %10 = arith.addf %4, %9 : vector<214x64xf32>
    %c0_15 = arith.constant 0 : index
    %c0_16 = arith.constant 0 : index
    %c2 = arith.constant 2 : index
    %c0_17 = arith.constant 0 : index
    %11 = vector.load %arg2[%c0_15, %c0_16, %c2, %c0_17] : memref<1x1x216x3xbf16, #tpu.memory_space<vmem>>, vector<1x1x214x3xbf16>
    %12 = vector.shape_cast %11 : vector<1x1x214x3xbf16> to vector<214x3xbf16>
    %c0_18 = arith.constant 0 : index
    %c2_19 = arith.constant 2 : index
    %c0_20 = arith.constant 0 : index
    %c0_21 = arith.constant 0 : index
    %13 = vector.load %arg5[%c0_18, %c2_19, %c0_20, %c0_21] : memref<3x3x3x64xbf16, #tpu.memory_space<vmem>>, vector<1x1x3x64xbf16>
    %14 = vector.shape_cast %13 : vector<1x1x3x64xbf16> to vector<3x64xbf16>
    %cst_22 = arith.constant dense<0.000000e+00> : vector<214x64xf32>
    %15 = tpu.matmul %12, %14, %cst_22 {dimension_numbers = #tpu.dot_dimension_numbers<[1], [0], [0], [1], [0, 0, 1, 1], [], []>} : vector<214x3xbf16>, vector<3x64xbf16>, vector<214x64xf32> -> vector<214x64xf32>
    %16 = arith.addf %10, %15 : vector<214x64xf32>
    %c0_23 = arith.constant 0 : index
    %c0_24 = arith.constant 0 : index
    %c0_25 = arith.constant 0 : index
    %c0_26 = arith.constant 0 : index
    %17 = vector.load %arg3[%c0_23, %c0_24, %c0_25, %c0_26] : memref<1x1x216x3xbf16, #tpu.memory_space<vmem>>, vector<1x1x214x3xbf16>
    %18 = vector.shape_cast %17 : vector<1x1x214x3xbf16> to vector<214x3xbf16>
    %c1_27 = arith.constant 1 : index
    %c0_28 = arith.constant 0 : index
    %c0_29 = arith.constant 0 : index
    %c0_30 = arith.constant 0 : index
    %19 = vector.load %arg5[%c1_27, %c0_28, %c0_29, %c0_30] : memref<3x3x3x64xbf16, #tpu.memory_space<vmem>>, vector<1x1x3x64xbf16>
    %20 = vector.shape_cast %19 : vector<1x1x3x64xbf16> to vector<3x64xbf16>
    %cst_31 = arith.constant dense<0.000000e+00> : vector<214x64xf32>
    %21 = tpu.matmul %18, %20, %cst_31 {dimension_numbers = #tpu.dot_dimension_numbers<[1], [0], [0], [1], [0, 0, 1, 1], [], []>} : vector<214x3xbf16>, vector<3x64xbf16>, vector<214x64xf32> -> vector<214x64xf32>
    %22 = arith.addf %16, %21 : vector<214x64xf32>
    %c0_32 = arith.constant 0 : index
    %c0_33 = arith.constant 0 : index
    %c1_34 = arith.constant 1 : index
    %c0_35 = arith.constant 0 : index
    %23 = vector.load %arg3[%c0_32, %c0_33, %c1_34, %c0_35] : memref<1x1x216x3xbf16, #tpu.memory_space<vmem>>, vector<1x1x214x3xbf16>
    %24 = vector.shape_cast %23 : vector<1x1x214x3xbf16> to vector<214x3xbf16>
    %c1_36 = arith.constant 1 : index
    %c1_37 = arith.constant 1 : index
    %c0_38 = arith.constant 0 : index
    %c0_39 = arith.constant 0 : index
    %25 = vector.load %arg5[%c1_36, %c1_37, %c0_38, %c0_39] : memref<3x3x3x64xbf16, #tpu.memory_space<vmem>>, vector<1x1x3x64xbf16>
    %26 = vector.shape_cast %25 : vector<1x1x3x64xbf16> to vector<3x64xbf16>
    %cst_40 = arith.constant dense<0.000000e+00> : vector<214x64xf32>
    %27 = tpu.matmul %24, %26, %cst_40 {dimension_numbers = #tpu.dot_dimension_numbers<[1], [0], [0], [1], [0, 0, 1, 1], [], []>} : vector<214x3xbf16>, vector<3x64xbf16>, vector<214x64xf32> -> vector<214x64xf32>
    %28 = arith.addf %22, %27 : vector<214x64xf32>
    %c0_41 = arith.constant 0 : index
    %c0_42 = arith.constant 0 : index
    %c2_43 = arith.constant 2 : index
    %c0_44 = arith.constant 0 : index
    %29 = vector.load %arg3[%c0_41, %c0_42, %c2_43, %c0_44] : memref<1x1x216x3xbf16, #tpu.memory_space<vmem>>, vector<1x1x214x3xbf16>
    %30 = vector.shape_cast %29 : vector<1x1x214x3xbf16> to vector<214x3xbf16>
    %c1_45 = arith.constant 1 : index
    %c2_46 = arith.constant 2 : index
    %c0_47 = arith.constant 0 : index
    %c0_48 = arith.constant 0 : index
    %31 = vector.load %arg5[%c1_45, %c2_46, %c0_47, %c0_48] : memref<3x3x3x64xbf16, #tpu.memory_space<vmem>>, vector<1x1x3x64xbf16>
    %32 = vector.shape_cast %31 : vector<1x1x3x64xbf16> to vector<3x64xbf16>
    %cst_49 = arith.constant dense<0.000000e+00> : vector<214x64xf32>
    %33 = tpu.matmul %30, %32, %cst_49 {dimension_numbers = #tpu.dot_dimension_numbers<[1], [0], [0], [1], [0, 0, 1, 1], [], []>} : vector<214x3xbf16>, vector<3x64xbf16>, vector<214x64xf32> -> vector<214x64xf32>
    %34 = arith.addf %28, %33 : vector<214x64xf32>
    %c0_50 = arith.constant 0 : index
    %c0_51 = arith.constant 0 : index
    %c0_52 = arith.constant 0 : index
    %c0_53 = arith.constant 0 : index
    %35 = vector.load %arg4[%c0_50, %c0_51, %c0_52, %c0_53] : memref<1x1x216x3xbf16, #tpu.memory_space<vmem>>, vector<1x1x214x3xbf16>
    %36 = vector.shape_cast %35 : vector<1x1x214x3xbf16> to vector<214x3xbf16>
    %c2_54 = arith.constant 2 : index
    %c0_55 = arith.constant 0 : index
    %c0_56 = arith.constant 0 : index
    %c0_57 = arith.constant 0 : index
    %37 = vector.load %arg5[%c2_54, %c0_55, %c0_56, %c0_57] : memref<3x3x3x64xbf16, #tpu.memory_space<vmem>>, vector<1x1x3x64xbf16>
    %38 = vector.shape_cast %37 : vector<1x1x3x64xbf16> to vector<3x64xbf16>
    %cst_58 = arith.constant dense<0.000000e+00> : vector<214x64xf32>
    %39 = tpu.matmul %36, %38, %cst_58 {dimension_numbers = #tpu.dot_dimension_numbers<[1], [0], [0], [1], [0, 0, 1, 1], [], []>} : vector<214x3xbf16>, vector<3x64xbf16>, vector<214x64xf32> -> vector<214x64xf32>
    %40 = arith.addf %34, %39 : vector<214x64xf32>
    %c0_59 = arith.constant 0 : index
    %c0_60 = arith.constant 0 : index
    %c1_61 = arith.constant 1 : index
    %c0_62 = arith.constant 0 : index
    %41 = vector.load %arg4[%c0_59, %c0_60, %c1_61, %c0_62] : memref<1x1x216x3xbf16, #tpu.memory_space<vmem>>, vector<1x1x214x3xbf16>
    %42 = vector.shape_cast %41 : vector<1x1x214x3xbf16> to vector<214x3xbf16>
    %c2_63 = arith.constant 2 : index
    %c1_64 = arith.constant 1 : index
    %c0_65 = arith.constant 0 : index
    %c0_66 = arith.constant 0 : index
    %43 = vector.load %arg5[%c2_63, %c1_64, %c0_65, %c0_66] : memref<3x3x3x64xbf16, #tpu.memory_space<vmem>>, vector<1x1x3x64xbf16>
    %44 = vector.shape_cast %43 : vector<1x1x3x64xbf16> to vector<3x64xbf16>
    %cst_67 = arith.constant dense<0.000000e+00> : vector<214x64xf32>
    %45 = tpu.matmul %42, %44, %cst_67 {dimension_numbers = #tpu.dot_dimension_numbers<[1], [0], [0], [1], [0, 0, 1, 1], [], []>} : vector<214x3xbf16>, vector<3x64xbf16>, vector<214x64xf32> -> vector<214x64xf32>
    %46 = arith.addf %40, %45 : vector<214x64xf32>
    %c0_68 = arith.constant 0 : index
    %c0_69 = arith.constant 0 : index
    %c2_70 = arith.constant 2 : index
    %c0_71 = arith.constant 0 : index
    %47 = vector.load %arg4[%c0_68, %c0_69, %c2_70, %c0_71] : memref<1x1x216x3xbf16, #tpu.memory_space<vmem>>, vector<1x1x214x3xbf16>
    %48 = vector.shape_cast %47 : vector<1x1x214x3xbf16> to vector<214x3xbf16>
    %c2_72 = arith.constant 2 : index
    %c2_73 = arith.constant 2 : index
    %c0_74 = arith.constant 0 : index
    %c0_75 = arith.constant 0 : index
    %49 = vector.load %arg5[%c2_72, %c2_73, %c0_74, %c0_75] : memref<3x3x3x64xbf16, #tpu.memory_space<vmem>>, vector<1x1x3x64xbf16>
    %50 = vector.shape_cast %49 : vector<1x1x3x64xbf16> to vector<3x64xbf16>
    %cst_76 = arith.constant dense<0.000000e+00> : vector<214x64xf32>
    %51 = tpu.matmul %48, %50, %cst_76 {dimension_numbers = #tpu.dot_dimension_numbers<[1], [0], [0], [1], [0, 0, 1, 1], [], []>} : vector<214x3xbf16>, vector<3x64xbf16>, vector<214x64xf32> -> vector<214x64xf32>
    %52 = arith.addf %46, %51 : vector<214x64xf32>
    %c0_77 = arith.constant 0 : index
    %c0_78 = arith.constant 0 : index
    %53 = vector.load %arg6[%c0_77, %c0_78] : memref<1x64xf32, #tpu.memory_space<vmem>>, vector<1x64xf32>
    %54 = vector.broadcast %53 : vector<1x64xf32> to vector<214x64xf32>
    %55 = arith.addf %52, %54 : vector<214x64xf32>
    %cst_79 = arith.constant 0.000000e+00 : f32
    %56 = vector.broadcast %cst_79 : f32 to vector<214x64xf32>
    %57 = arith.maximumf %55, %56 : vector<214x64xf32>
    %58 = arith.truncf %57 : vector<214x64xf32> to vector<214x64xbf16>
    %c0_80 = arith.constant 0 : index
    %c0_81 = arith.constant 0 : index
    %c0_82 = arith.constant 0 : index
    %c0_83 = arith.constant 0 : index
    %59 = vector.load %arg7[%c0_80, %c0_81, %c0_82, %c0_83] : memref<1x1x214x64xbf16, #tpu.memory_space<vmem>>, vector<1x1x214x64xbf16>
    %60 = vector.shape_cast %59 : vector<1x1x214x64xbf16> to vector<214x64xbf16>
    %61 = vector.shape_cast %58 : vector<214x64xbf16> to vector<1x1x214x64xbf16>
    tpu.vector_store %arg7[%c0_80, %c0_81, %c0_82, %c0_83], %61 {strides = array<i32>} : memref<1x1x214x64xbf16, #tpu.memory_space<vmem>>, vector<1x1x214x64xbf16>,
    return
  }
  func.func @transform_0(%arg0: i32, %arg1: i32) -> (i32, i32, i32, i32) {
    %c0_i32 = arith.constant 0 : i32
    %0 = arith.addi %arg1, %c0_i32 : i32
    %c0_i32_0 = arith.constant 0 : i32
    %c0_i32_1 = arith.constant 0 : i32
    %c0_i32_2 = arith.constant 0 : i32
    return %arg0, %0, %c0_i32_0, %c0_i32_1 : i32, i32, i32, i32
  }
  func.func @transform_1(%arg0: i32, %arg1: i32) -> (i32, i32, i32, i32) {
    %c1_i32 = arith.constant 1 : i32
    %0 = arith.addi %arg1, %c1_i32 : i32
    %c0_i32 = arith.constant 0 : i32
    %c0_i32_0 = arith.constant 0 : i32
    %c0_i32_1 = arith.constant 0 : i32
    return %arg0, %0, %c0_i32, %c0_i32_0 : i32, i32, i32, i32
  }
  func.func @transform_2(%arg0: i32, %arg1: i32) -> (i32, i32, i32, i32) {
    %c2_i32 = arith.constant 2 : i32
    %0 = arith.addi %arg1, %c2_i32 : i32
    %c0_i32 = arith.constant 0 : i32
    %c0_i32_0 = arith.constant 0 : i32
    %c0_i32_1 = arith.constant 0 : i32
    return %arg0, %0, %c0_i32, %c0_i32_0 : i32, i32, i32, i32
  }
  func.func @transform_3(%arg0: i32, %arg1: i32) -> (i32, i32, i32, i32) {
    %c0_i32 = arith.constant 0 : i32
    %c0_i32_0 = arith.constant 0 : i32
    %c0_i32_1 = arith.constant 0 : i32
    %c0_i32_2 = arith.constant 0 : i32
    %c0_i32_3 = arith.constant 0 : i32
    return %c0_i32, %c0_i32_0, %c0_i32_1, %c0_i32_2 : i32, i32, i32, i32
  }
  func.func @transform_4(%arg0: i32, %arg1: i32) -> (i32, i32) {
    %c0_i32 = arith.constant 0 : i32
    %c0_i32_0 = arith.constant 0 : i32
    %c0_i32_1 = arith.constant 0 : i32
    return %c0_i32, %c0_i32_0 : i32, i32
  }
  func.func @transform_5(%arg0: i32, %arg1: i32) -> (i32, i32, i32, i32) {
    %c0_i32 = arith.constant 0 : i32
    %c0_i32_0 = arith.constant 0 : i32
    %c0_i32_1 = arith.constant 0 : i32
    return %arg0, %arg1, %c0_i32, %c0_i32_0 : i32, i32, i32, i32
  }
}

</mosaic_0001>

<bundles_post_ra>
// kernel: tpu_custom_call.1
= control target key start
LH: loop header
LB: loop body
LE: loop exit
PB: predicated region body
PF: predicated region fallthrough
CT: control target
= control target key end

     0   :  { %s4062_s18 = smov 0   ;;  %s4064_s19 = smov 0   ;;  %s5186_s0 = inlined_call_operand.vmem [shape: bf16[1,216,216,3], index: 0, kind: input, shape index: {}]   ;;  %s5187_s1 = inlined_call_operand.vmem [shape: bf16[1,216,216,3], index: 1, kind: input, shape index: {}]   ;;  %s5188_s2 = inlined_call_operand.vmem [shape: bf16[1,216,216,3], index: 2, kind: input, shape index: {}]   ;;  %s5189_s3 = inlined_call_operand.vmem [shape: bf16[3,3,3,64], index: 3, kind: input, shape index: {}]   ;;  %s5190_s4 = inlined_call_operand.vmem [shape: f32[1,64], index: 4, kind: input, shape index: {}]   ;;  %s5191_s5 = inlined_call_operand.vmem [shape: bf16[1,214,214,64], index: 5, kind: output, shape index: {}]  }
   0x1   :  { %s4066_s20 = smov 0  }
   0x2 LB: > { %s24_s21 = sadd.s32 1, %s4025_s19  ;;  %p3279_p0 = scmp.ge.s32.totalorder %s4029_s20, 1  ;;  %s4029_s20 = sphi %s4066_s20, %s15_s20   ;;  %s4025_s19 = sphi %s4064_s19, %s5252_s19   ;;  %s4021_s18 = sphi %s4062_s18, %s5251_s18  }
   0x3   : > { %p25_p1 = scmp.ge.s32.totalorder %s24_s21, 214  ;;  %p247_p2 = scmp.lt.s32.totalorder %s4029_s20, 215 }
   0x5   : > { %s5254_s21 = smov (%p25_p1, %s24_s21), 0  ;;  %p248_p3 = pnand %p3279_p0, %p247_p2 }
   0x7   : > { %251 = sbr.rel (%p248_p3) target bundleno = 486 (0x1e6), region = 40 }
   0xc   : > { %v3284_v0 = vld [vmem:[%s5189_s3 + $0x2] sm:$0x3]  ;;  %vm598_vm0 = vcmask 1040384   ;;  %vm599_vm1 = vcmask 1041408   ;;  %p305_p4 = scmp.lt.s32.totalorder %s4021_s18, 215  ;;  %v4031_v1 = vmov 65535  }
   0xd   : > { %v600_v2 = vsel %vm598_vm0, 4294967295, %v4031_v1  ;;  %v3328_v3 = vld [vmem:[%s5189_s3 + $0x4] sm:$0x3]  ;;  %v371_v5 = vld [vmem:[%s5189_s3] sm:$0x3]  ;;  %s312_s29 = sadd.s32 1, %s4021_s18 }
   0xe   : > { %v4089_v4 = vsel %vm599_vm1, %v600_v2, 0  ;;  %s306_s26 = scalar_select %p305_p4, %s4021_s18, 215  ;;  %vm443_vm2 = vsmask.f32 7424  ;;  %vm555_vm3 = vcmask 23552   ;;  %vm934_vm4 = vcmask 1046528  }
   0xf   : > { %v603_v6 = vand.u32 %v3284_v0, %v4089_v4  ;;  %v4097_v7 = vand.u32 %v3328_v3, %v4089_v4  ;;  %v4100_v8 = vand.u32 %v4089_v4, %v371_v5  ;;  %p4108_p5 = scmp.lt.s32.totalorder %s312_s29, 215  ;;  %v3344_v13 = vld [vmem:[%s5189_s3 + $0x6] sm:$0x3]  ;;  %v3373_v14 = vld [vmem:[%s5189_s3 + $0x8] sm:$0x3]  ;;  %s323_s24 = sadd.s32 2, %s4021_s18 }
  0x10   : > { %s3930_s30 = smul.u32 108, %s306_s26  ;;  %v4156_v30 = vand.u32 %v3344_v13, %v4089_v4  ;;  %v4164_v35 = vand.u32 %v3373_v14, %v4089_v4  ;;  %p326_p6 = scmp.lt.s32.totalorder %s323_s24, 215  ;;  %vm3112_vm5 = vcmask 519168   ;;  %vm3139_vm6 = vcmask 518144  }
  0x11   : > { %3658 = vmatprep.subr.bf16.mxu0 %v603_v6  ;;  %3928 = vmatprep.subr.bf16.mxu1 %v603_v6  ;;  %s5256_s29 = smov (!%p4108_p5, %s312_s29), 215  ;;  %p336_p7 = scmp.lt.s32.totalorder %s4021_s18, 213 }
  0x12   : > { %3659 = vmatpush3.bf16.msra.mxu0 %v603_v6  ;;  %3929 = vmatpush3.bf16.msra.mxu1 %v603_v6  ;;  %s4106_s8 = scalar_lea.vmem %s5186_s0, %s3930_s30  ;;  %s3931_s14 = smul.u32 108, %s5256_s29 }
  0x13   : > { %v344_v9 = vld [vmem:[%s4106_s8] sm:$0xf]  ;;  %v4114_v10 = vld [vmem:[%s4106_s8 + $0x4] sm:$0xf]  ;;  %3718 = vmatprep.subr.bf16.mxu0 %v4097_v7  ;;  %3688 = vmatprep.subr.bf16.mxu1 %v4100_v8  ;;  %v4122_v12 = vld [vmem:[%s4106_s8 + $0x8] sm:$0xff]   ;;  %s5258_s24 = smov (!%p326_p6, %s323_s24), 215 }
  0x14   : > { %v4119_v11 = vcombine.low %v344_v9, %v4114_v10  ;;  %v452_v17 = vshll.u32 %v4122_v12, 16  ;;  %v456_v18 = vshrl.u32 %v4122_v12, 16  ;;  %v4135_v19 = vld [vmem:[%s4106_s8 + $0x40] sm:$0xff]   ;;  %v4138_v20 = vld [vmem:[%s4106_s8 + $0x48] sm:$0xff]   ;;  %v4141_v21 = vld [vmem:[%s4106_s8 + $0x10] sm:$0xff]   ;;  %s4231_s17 = scalar_lea.vmem %s5187_s1, %s3931_s14  ;;  %s3932_s27 = smul.u32 108, %s5258_s24 }
  0x15   : > { %v508_v24 = vshll.u32 %v4135_v19, 16  ;;  %v512_v25 = vshrl.u32 %v4135_v19, 16  ;;  %v516_v26 = vshll.u32 %v4138_v20, 16  ;;  %v520_v27 = vshrl.u32 %v4138_v20, 16  ;;  %v4153_v29 = vld [vmem:[%s4106_s8 + $0x50] sm:$0xff]   ;;  %v4161_v34 = vld [vmem:[%s4106_s8 + $0x18] sm:$0xff]  }
  0x16   : > { %v445_v15 = vshrl.u32 %v4119_v11, 16  ;;  %v447_v16 = vshll.u32 %v4119_v11, 16  ;;  %v454_v23 = vrot.slane %v452_v17, 1  ;;  %v460_v28 = vshll.u32 %v4141_v21, 16  ;;  %v4172_v43 = vld [vmem:[%s4106_s8 + $0x58] sm:$0xff]   ;;  %v4176_v45 = vld [vmem:[%s4106_s8 + $0x20] sm:$0xff]   ;;  %s4288_s30 = scalar_lea.vmem %s5188_s2, %s3932_s27 }
  0x17   : > { %v4158_v33 = vrot.slane %v508_v24, 1  ;;  %v518_v36 = vrot.slane %v516_v26, 1  ;;  %v524_v38 = vshll.u32 %v4153_v29, 16  ;;  %v464_v39 = vshrl.u32 %v4141_v21, 16  ;;  %v4181_v50 = vld [vmem:[%s4106_s8 + $0x60] sm:$0xff]   ;;  %v4188_v55 = vld [vmem:[%s4106_s8 + $0x28] sm:$0xff]  }
  0x18   : > { %v449_v22 = vrot.slane %v447_v16, 1  ;;  %v458_v32 = vor.u32 %v456_v18, %v454_v23  ;;  %v462_v37 = vrot.slane %v460_v28, 1  ;;  %v468_v42 = vshll.u32 %v4161_v34, 16  ;;  %v4204_v3 = vld [vmem:[%s4106_s8 + $0x68] ss:$0 sps:$4 sm:$0xff]   ;;  %v4209_v13 = vld [vmem:[%s4106_s8 + $0x30] sm:$0xff]  }
  0x19   : > { %v514_v41 = vor.u32 %v512_v25, %v4158_v33  ;;  %v528_v44 = vshrl.u32 %v4153_v29, 16  ;;  %v522_v46 = vor.u32 %v520_v27, %v518_v36  ;;  %v526_v48 = vrot.slane %v524_v38, 1  ;;  %s5260_s18 = smov (!%p336_p7, %s4021_s18), 213 }
  0x1a   : > { %v450_v31 = vor.u32 %v449_v22, %v445_v15  ;;  %v463_v47 = vsel %vm443_vm2, %v458_v32, %v462_v37  ;;  %v466_v49 = vor.u32 %v464_v39, %v462_v37  ;;  %v470_v52 = vrot.slane %v468_v42, 1  ;;  %s3933_s12 = smul.u32 108, %s5260_s18 }
  0x1b   : > { %v519_v51 = vsel %vm443_vm2, %v514_v41, %v518_v36  ;;  %v532_v53 = vshll.u32 %v4172_v43, 16  ;;  %v472_v54 = vshrl.u32 %v4161_v34, 16  ;;  %v527_v56 = vsel %vm443_vm2, %v522_v46, %v526_v48 }
  0x1c   : > { %v455_v40 = vsel %vm443_vm2, %v450_v31, %v454_v23  ;;  %3676 = vmatprep.mubr.msk.bf16.mxu1 %vm555_vm3, %v519_v51  ;;  %v530_v57 = vor.u32 %v528_v44, %v526_v48  ;;  %v476_v58 = vshll.u32 %v4176_v45, 16  ;;  %v536_v59 = vshrl.u32 %v4172_v43, 16  ;;  %v4218_v23 = vld [vmem:[%s4106_s8 + $0x38] sm:$0xff]   ;;  %s5036_s14 = scalar_lea.vmem %s5191_s5, %s3933_s12 }
  0x1d   : > { %3660 = vmatprep.mubr.msk.bf16.mxu0 %vm555_vm3, %v455_v40  ;;  %3677 = vmatmul.mubr.msk.bf16.vlgmr.msra.gmra.mxu1 %vm555_vm3, %v527_v56  ;;  %v471_v60 = vsel %vm443_vm2, %v466_v49, %v470_v52  ;;  %v534_v61 = vrot.slane %v532_v53, 1  ;;  %v474_v62 = vor.u32 %v472_v54, %v470_v52  ;;  %v540_v63 = vshll.u32 %v4181_v50, 16  ;;  %v928_v40 = vld [vmem:[%s4106_s8] sm:$0xe]  ;;  %v3405_v56 = vld [vmem:[%s5189_s3 + $0xc] sm:$0x3] }
  0x1e   : > { %3661 = vmatmul.mubr.msk.bf16.vlgmr.msra.gmra.mxu0 %vm555_vm3, %v463_v47  ;;  %3689 = vmatpush3.bf16.msra.mxu1 %v4100_v8  ;;  %v478_v0 = vrot.slane %v476_v58, 1  ;;  %v480_v1 = vshrl.u32 %v4176_v45, 16  ;;  %v484_v2 = vshll.u32 %v4188_v55, 16  ;;  %v544_v5 = vshrl.u32 %v4181_v50, 16 }
  0x1f   : > { %3719 = vmatpush3.bf16.msra.mxu0 %v4097_v7  ;;  %3664 = vmatprep.mubr.msk.bf16.mxu0 %vm555_vm3, %v471_v60  ;;  %v535_v6 = vsel %vm443_vm2, %v530_v57, %v534_v61  ;;  %v538_v7 = vor.u32 %v536_v59, %v534_v61  ;;  %v542_v9 = vrot.slane %v540_v63, 1  ;;  %v548_v16 = vshll.u32 %v4204_v3, 16 }
  0x20   : > { %3778 = vmatprep.subr.bf16.mxu0 %v4164_v35  ;;  %3748 = vmatprep.subr.bf16.mxu1 %v4156_v30  ;;  %v479_v8 = vsel %vm443_vm2, %v474_v62, %v478_v0  ;;  %v482_v14 = vor.u32 %v480_v1, %v478_v0  ;;  %v486_v15 = vrot.slane %v484_v2, 1  ;;  %v488_v18 = vshrl.u32 %v4188_v55, 16 }
  0x21   : > { %3680 = vmatprep.mubr.msk.bf16.mxu1 %vm555_vm3, %v535_v6  ;;  %v546_v17 = vor.u32 %v544_v5, %v542_v9  ;;  %v492_v22 = vshll.u32 %v4209_v13, 16  ;;  %v543_v24 = vsel %vm443_vm2, %v538_v7, %v542_v9  ;;  %v550_v26 = vrot.slane %v548_v16, 1  ;;  %v1178_v5 = vld [vmem:[%s4231_s17] sm:$0xf]  ;;  %v4323_v6 = vld [vmem:[%s4231_s17 + $0x4] sm:$0xf] }
  0x22   : > { %v487_v25 = vsel %vm443_vm2, %v482_v14, %v486_v15  ;;  %v496_v27 = vshrl.u32 %v4209_v13, 16  ;;  %v500_v31 = vshll.u32 %v4218_v23, 16  ;;  %v490_v36 = vor.u32 %v488_v18, %v486_v15  ;;  %v3974_v15 = vld [vmem:[%s4106_s8 + $0x68] ss:$0 sps:$4 sm:$0x77]  }
  0x23   : > { %v494_v28 = vrot.slane %v492_v22, 1  ;;  %v551_v32 = vsel %vm443_vm2, %v546_v17, %v550_v26  ;;  %v552_v37 = vshrl.u32 %v4204_v3, 16  ;;  %v504_v42 = vshrl.u32 %v4218_v23, 16 }
  0x24   : > { %v502_v39 = vrot.slane %v500_v31, 1  ;;  %v3329_v47 = vcombine.low %v928_v40, %v4114_v10  ;;  %v936_v51 = vrot.slane %v4122_v12, 1  ;;  %v3389_v10 = vld [vmem:[%s5189_s3 + $0xa] sm:$0x3]  ;;  %v950_v62 = vrot.slane %v4135_v19, 1 }
  0x25   : > { %3681 = vmatmul.mubr.msk.bf16.gmra.mxu1 %vm555_vm3, %v543_v24  ;;  %v498_v38 = vor.u32 %v496_v27, %v494_v28  ;;  %v495_v41 = vsel %vm443_vm2, %v490_v36, %v494_v28  ;;  %v554_v44 = vor.u32 %v552_v37, %v550_v26  ;;  %v4256_v54 = vand.u32 %v3389_v10, %v4089_v4  ;;  %v3434_v26 = vld [vmem:[%s5189_s3 + $0xe] sm:$0x3]  ;;  %v4362_v36 = vld [vmem:[%s4231_s17 + $0x20] sm:$0xff]  }
  0x26   : > { %3665 = vmatmul.mubr.msk.bf16.gmra.mxu0 %vm555_vm3, %v479_v8  ;;  %3684 = vmatprep.mubr.msk.bf16.mxu1 %vm555_vm3, %v551_v32  ;;  %v506_v48 = vor.u32 %v504_v42, %v502_v39  ;;  %v935_v49 = vrot.slane %v3329_v47, 1  ;;  %v954_v1 = vrot.slane %v4153_v29, 1  ;;  %v956_v2 = vrot.slane %v4172_v43, 1  ;;  %v4336_v8 = vld [vmem:[%s4231_s17 + $0x8] sm:$0xff]  }
  0x27   : > { %3668 = vmatprep.mubr.msk.bf16.mxu0 %vm555_vm3, %v487_v25  ;;  %v503_v46 = vsel %vm443_vm2, %v498_v38, %v502_v39  ;;  %v3345_v9 = vcombine.low %v1178_v5, %v4323_v6  ;;  %v1503_v22 = vshll.u32 %v4336_v8, 16  ;;  %v1507_v25 = vshrl.u32 %v4336_v8, 16  ;;  %v4377_v42 = vld [vmem:[%s4231_s17 + $0x28] sm:$0xff]   ;;  %v4429_v5 = vld [vmem:[%s4231_s17 + $0x50] sm:$0xff]  }
  0x28   : > { %v511_v52 = vsel %vm443_vm2, %v506_v48, %v4158_v33  ;;  %v937_v53 = vsel %vm934_vm4, %v935_v49, %v936_v51  ;;  %v940_v33 = vrot.slane %v4161_v34, 1  ;;  %v957_v7 = vsel %vm934_vm4, %v954_v1, %v956_v2 }
  0x29   : > { %v1497_v17 = vshrl.u32 %v3345_v9, 16  ;;  %v4365_v37 = vand.u32 %v3434_v26, %v4089_v4  ;;  %v1528_v49 = vshrl.u32 %v4362_v36, 16  ;;  %v4453_v26 = vld [vmem:[%s4231_s17 + $0x68] ss:$0 sps:$4 sm:$0xff]  }
  0x2d   : > { %3685 = vmatmul.mubr.msk.bf16.gmra.mxu1 %vm555_vm3, %v554_v44  ;;  %v1524_v44 = vshll.u32 %v4362_v36, 16 }
  0x2e   : > { %3669 = vmatmul.mubr.msk.bf16.gmra.mxu0 %vm555_vm3, %v495_v41  ;;  %3690 = vmatprep.mubr.msk.bf16.mxu1 %vm555_vm3, %v4119_v11  ;;  %v938_v11 = vrot.slane %v4141_v21, 1  ;;  %v3450_v41 = vld [vmem:[%s5189_s3 + $0x10] sm:$0x3] }
  0x2f   : > { %3672 = vmatprep.mubr.msk.bf16.mxu0 %vm555_vm3, %v503_v46  ;;  %v1526_v10 = vrot.slane %v1524_v44, 1 }
  0x30   : > { %v939_v57 = vsel %vm934_vm4, %v936_v51, %v938_v11  ;;  %v941_v58 = vsel %vm934_vm4, %v938_v11, %v940_v33  ;;  %v1531_v51 = vshll.u32 %v4377_v42, 16 }
  0x31   : > { %v1530_v11 = vor.u32 %v1528_v49, %v1526_v10 }
  0x35   : > { %3691 = vmatmul.mubr.msk.bf16.vlgmr.msra.gmra.mxu1 %vm555_vm3, %v4122_v12  ;;  %v4273_v12 = vand.u32 %v3405_v56, %v4089_v4 }
  0x36   : > { %3673 = vmatmul.mubr.msk.bf16.gmra.mxu0 %vm555_vm3, %v511_v52  ;;  %3749 = vmatpush3.bf16.msra.mxu1 %v4156_v30  ;;  %v944_v30 = vrot.slane %v4188_v55, 1  ;;  %v4387_v52 = vand.u32 %v3450_v41, %v4089_v4  ;;  %v4401_v4 = vld [vmem:[%s4231_s17 + $0x38] sm:$0xff]  }
  0x37   : > { %3720 = vmatprep.mubr.msk.bf16.mxu0 %vm555_vm3, %v937_v53  ;;  %3694 = vmatprep.mubr.msk.bf16.mxu1 %vm555_vm3, %v4141_v21  ;;  %v942_v21 = vrot.slane %v4176_v45, 1  ;;  %v4391_v53 = vld [vmem:[%s4231_s17 + $0x30] sm:$0xff]  }
  0x38   : > { %3808 = vmatprep.subr.bf16.mxu1 %v4256_v54  ;;  %v1538_v56 = vshll.u32 %v4391_v53, 16 }
  0x39   : > { %v945_v59 = vsel %vm934_vm4, %v942_v21, %v944_v30 }
  0x3d   : > { %3695 = vmatmul.mubr.msk.bf16.gmra.mxu1 %vm555_vm3, %v4161_v34  ;;  %v946_v34 = vrot.slane %v4209_v13, 1 }
  0x3e   : > { %3721 = vmatmul.mubr.msk.bf16.vlgmr.msra.gmra.mxu0 %vm555_vm3, %v939_v57  ;;  %3698 = vmatprep.mubr.msk.bf16.mxu1 %vm555_vm3, %v4176_v45  ;;  %v948_v45 = vrot.slane %v4218_v23, 1 }
  0x3f   : > { %3779 = vmatpush3.bf16.msra.mxu0 %v4164_v35  ;;  %3724 = vmatprep.mubr.msk.bf16.mxu0 %vm555_vm3, %v941_v58  ;;  %v943_v35 = vsel %vm934_vm4, %v940_v33, %v942_v21  ;;  %v947_v60 = vsel %vm934_vm4, %v944_v30, %v946_v34  ;;  %v1533_v33 = vrot.slane %v1531_v51, 1  ;;  %v1535_v58 = vshrl.u32 %v4377_v42, 16 }
  0x40   : > { %3838 = vmatprep.subr.bf16.mxu0 %v4273_v12  ;;  %v949_v61 = vsel %vm934_vm4, %v946_v34, %v948_v45  ;;  %v951_v63 = vsel %vm934_vm4, %v948_v45, %v950_v62  ;;  %v1542_v21 = vshrl.u32 %v4391_v53, 16  ;;  %v1545_v30 = vshll.u32 %v4401_v4, 16 }
  0x41   : > { %v1537_v34 = vor.u32 %v1535_v58, %v1533_v33  ;;  %v1818_v51 = vrot.slane %v4336_v8, 1 }
  0x45   : > { %3699 = vmatmul.mubr.msk.bf16.gmra.mxu1 %vm555_vm3, %v4188_v55  ;;  %v952_v55 = vrot.slane %v4138_v20, 1 }
  0x46   : > { %3725 = vmatmul.mubr.msk.bf16.gmra.mxu0 %vm555_vm3, %v943_v35  ;;  %3702 = vmatprep.mubr.msk.bf16.mxu1 %vm555_vm3, %v4209_v13  ;;  %v1499_v13 = vshll.u32 %v3345_v9, 16  ;;  %v1540_v35 = vrot.slane %v1538_v56, 1  ;;  %v2060_v56 = vld [vmem:[%s4288_s30] sm:$0xf] }
  0x47   : > { %3728 = vmatprep.mubr.msk.bf16.mxu0 %vm555_vm3, %v945_v59  ;;  %v953_v0 = vsel %vm934_vm4, %v950_v62, %v952_v55  ;;  %v4411_v59 = vld [vmem:[%s4231_s17 + $0x40] sm:$0xff]  }
  0x48   : > { %v1501_v18 = vrot.slane %v1499_v13, 1  ;;  %v1544_v45 = vor.u32 %v1542_v21, %v1540_v35  ;;  %v1552_v62 = vshll.u32 %v4411_v59, 16  ;;  %v1566_v13 = vshll.u32 %v4429_v5, 16 }
  0x4d   : > { %3703 = vmatmul.mubr.msk.bf16.gmra.mxu1 %vm555_vm3, %v4218_v23  ;;  %v4350_v23 = vld [vmem:[%s4231_s17 + $0x18] sm:$0xff]  }
  0x4e   : > { %3729 = vmatmul.mubr.msk.bf16.gmra.mxu0 %vm555_vm3, %v947_v60  ;;  %3706 = vmatprep.mubr.msk.bf16.mxu1 %vm555_vm3, %v4135_v19  ;;  %v955_v19 = vsel %vm934_vm4, %v952_v55, %v954_v1  ;;  %v1517_v31 = vshll.u32 %v4350_v23, 16  ;;  %v1521_v47 = vshrl.u32 %v4350_v23, 16  ;;  %v1547_v60 = vrot.slane %v1545_v30, 1 }
  0x4f   : > { %3732 = vmatprep.mubr.msk.bf16.mxu0 %vm555_vm3, %v949_v61  ;;  %v4419_v61 = vld [vmem:[%s4231_s17 + $0x48] sm:$0xff]   ;;  %v1541_v55 = vsel %vm443_vm2, %v1537_v34, %v1540_v35  ;;  %v1556_v1 = vshrl.u32 %v4411_v59, 16  ;;  %v1826_v34 = vrot.slane %v4377_v42, 1 }
  0x50   : > { %v1519_v40 = vrot.slane %v1517_v31, 1 }
  0x55   : > { %3707 = vmatmul.mubr.msk.bf16.gmra.mxu1 %vm555_vm3, %v4138_v20  ;;  %v958_v20 = vrot.slane %v4181_v50, 1 }
  0x56   : > { %3733 = vmatmul.mubr.msk.bf16.gmra.mxu0 %vm555_vm3, %v951_v63  ;;  %3710 = vmatprep.mubr.msk.bf16.mxu1 %vm555_vm3, %v4153_v29  ;;  %v960_v29 = vrot.slane %v4204_v3, 1  ;;  %v1505_v3 = vrot.slane %v1503_v22, 1  ;;  %v1549_v63 = vshrl.u32 %v4401_v4, 16  ;;  %v1568_v22 = vrot.slane %v1566_v13, 1 }
  0x57   : > { %3736 = vmatprep.mubr.msk.bf16.mxu0 %vm555_vm3, %v953_v0  ;;  %v959_v14 = vsel %vm934_vm4, %v956_v2, %v958_v20  ;;  %v1548_v0 = vsel %vm443_vm2, %v1544_v45, %v1547_v60  ;;  %v1559_v2 = vshll.u32 %v4419_v61, 16  ;;  %v4504_v45 = vld [vmem:[%s4288_s30 + $0x10] sm:$0xff]  }
  0x58   : > { %v961_v16 = vsel %vm934_vm4, %v958_v20, %v960_v29  ;;  %v1509_v38 = vor.u32 %v1507_v25, %v1505_v3 }
  0x59   : > { %v1561_v20 = vrot.slane %v1559_v2, 1 }
  0x5d   : > { %3711 = vmatmul.mubr.msk.bf16.gmra.mxu1 %vm555_vm3, %v4172_v43  ;;  %v4344_v43 = vld [vmem:[%s4231_s17 + $0x10] sm:$0xff]  }
  0x5e   : > { %3737 = vmatmul.mubr.msk.bf16.gmra.mxu0 %vm555_vm3, %v955_v19  ;;  %3714 = vmatprep.mubr.msk.bf16.mxu1 %vm555_vm3, %v4181_v50  ;;  %v1502_v50 = vor.u32 %v1501_v18, %v1497_v17  ;;  %v1510_v24 = vshll.u32 %v4344_v43, 16  ;;  %v1514_v28 = vshrl.u32 %v4344_v43, 16  ;;  %v1554_v19 = vrot.slane %v1552_v62, 1 }
  0x5f   : > { %3740 = vmatprep.mubr.msk.bf16.mxu0 %vm555_vm3, %v957_v7  ;;  %v1551_v7 = vor.u32 %v1549_v63, %v1547_v60  ;;  %v1570_v17 = vshrl.u32 %v4429_v5, 16 }
  0x60   : > { %v1506_v27 = vsel %vm443_vm2, %v1502_v50, %v1505_v3  ;;  %v1512_v32 = vrot.slane %v1510_v24, 1  ;;  %v4447_v50 = vld [vmem:[%s4231_s17 + $0x60] sm:$0xff]  }
  0x61   : > { %v1572_v24 = vor.u32 %v1570_v17, %v1568_v22 }
  0x62   : > { %v1516_v39 = vor.u32 %v1514_v28, %v1512_v32  ;;  %v1513_v46 = vsel %vm443_vm2, %v1509_v38, %v1512_v32  ;;  %v1811_v32 = vld [vmem:[%s4231_s17] sm:$0xe] }
  0x63   : > { %v3390_v44 = vcombine.low %v1811_v32, %v4323_v6 }
  0x64   : > { %v1520_v48 = vsel %vm443_vm2, %v1516_v39, %v1519_v40  ;;  %v1584_v39 = vshrl.u32 %v4447_v50, 16 }
  0x65   : > { %3715 = vmatmul.mubr.msk.bf16.gmra.mxu1 %vm555_vm3, %v3974_v15  ;;  %v1563_v15 = vshrl.u32 %v4419_v61, 16  ;;  %v1817_v49 = vrot.slane %v3390_v44, 1 }
  0x66   : > { %3741 = vmatmul.mubr.msk.bf16.gmra.mxu0 %vm555_vm3, %v959_v14  ;;  %3750 = vmatprep.mubr.msk.bf16.mxu1 %vm555_vm3, %v3345_v9  ;;  %v1558_v9 = vor.u32 %v1556_v1, %v1554_v19  ;;  %v1555_v14 = vsel %vm443_vm2, %v1551_v7, %v1554_v19  ;;  %v4537_v1 = vld [vmem:[%s4288_s30 + $0x30] sm:$0xff]  }
  0x67   : > { %3744 = vmatprep.mubr.msk.bf16.mxu0 %vm555_vm3, %v961_v16  ;;  %v1565_v3 = vor.u32 %v1563_v15, %v1561_v20 }
  0x68   : > { %v1562_v16 = vsel %vm443_vm2, %v1558_v9, %v1561_v20  ;;  %v4553_v9 = vld [vmem:[%s4288_s30 + $0x40] sm:$0xff]  }
  0x69   : > { %v1569_v28 = vsel %vm443_vm2, %v1565_v3, %v1568_v22 }
  0x6d   : > { %3751 = vmatmul.mubr.msk.bf16.vlgmr.msra.gmra.mxu1 %vm555_vm3, %v4336_v8  ;;  %v1820_v8 = vrot.slane %v4344_v43, 1 }
  0x6e   : > { %3745 = vmatmul.mubr.msk.bf16.gmra.mxu0 %vm555_vm3, %v960_v29  ;;  %3809 = vmatpush3.bf16.msra.mxu1 %v4256_v54  ;;  %v1523_v54 = vor.u32 %v1521_v47, %v1519_v40  ;;  %v4437_v29 = vld [vmem:[%s4231_s17 + $0x58] sm:$0xff]   ;;  %v1588_v40 = vshll.u32 %v4453_v26, 16 }
  0x6f   : > { %3780 = vmatprep.mubr.msk.bf16.mxu0 %vm555_vm3, %v1506_v27  ;;  %3754 = vmatprep.mubr.msk.bf16.mxu1 %vm555_vm3, %v4344_v43  ;;  %v1573_v18 = vshll.u32 %v4437_v29, 16  ;;  %v1580_v27 = vshll.u32 %v4447_v50, 16  ;;  %v1577_v31 = vshrl.u32 %v4437_v29, 16  ;;  %v1821_v30 = vsel %vm934_vm4, %v1818_v51, %v1820_v8 }
  0x70   : > { %3868 = vmatprep.subr.bf16.mxu1 %v4365_v37  ;;  %v1527_v57 = vsel %vm443_vm2, %v1523_v54, %v1526_v10  ;;  %v3988_v54 = vld [vmem:[%s4231_s17 + $0x68] ss:$0 sps:$4 sm:$0x77]   ;;  %v1824_v43 = vrot.slane %v4362_v36, 1  ;;  %v1838_v7 = vrot.slane %v4437_v29, 1 }
  0x71   : > { %v1575_v25 = vrot.slane %v1573_v18, 1  ;;  %v1582_v41 = vrot.slane %v1580_v27, 1 }
  0x72   : > { %v1827_v62 = vsel %vm934_vm4, %v1824_v43, %v1826_v34 }
  0x73   : > { %v1576_v38 = vsel %vm443_vm2, %v1572_v24, %v1575_v25  ;;  %v1586_v47 = vor.u32 %v1584_v39, %v1582_v41  ;;  %v2693_v24 = vld [vmem:[%s4288_s30] sm:$0xe] }
  0x75   : > { %3755 = vmatmul.mubr.msk.bf16.gmra.mxu1 %vm555_vm3, %v4350_v23 }
  0x76   : > { %3781 = vmatmul.mubr.msk.bf16.vlgmr.msra.gmra.mxu0 %vm555_vm3, %v1513_v46  ;;  %3758 = vmatprep.mubr.msk.bf16.mxu1 %vm555_vm3, %v4362_v36  ;;  %v1579_v46 = vor.u32 %v1577_v31, %v1575_v25  ;;  %v1828_v36 = vrot.slane %v4391_v53, 1  ;;  %v4584_v25 = vld [vmem:[%s4288_s30 + $0x58] sm:$0xff]   ;;  %v2392_v31 = vshll.u32 %v4504_v45, 16 }
  0x77   : > { %3839 = vmatpush3.bf16.msra.mxu0 %v4273_v12  ;;  %3784 = vmatprep.mubr.msk.bf16.mxu0 %vm555_vm3, %v1520_v48  ;;  %v1534_v12 = vsel %vm443_vm2, %v1530_v11, %v1533_v33  ;;  %v1590_v48 = vrot.slane %v1588_v40, 1  ;;  %v1819_v11 = vsel %vm934_vm4, %v1817_v49, %v1818_v51  ;;  %v1592_v33 = vshrl.u32 %v4453_v26, 16  ;;  %v4004_v49 = vld [vmem:[%s4288_s30 + $0x68] ss:$0 sps:$4 sm:$0x77]  }
  0x78   : > { %3898 = vmatprep.subr.bf16.mxu0 %v4387_v52  ;;  %v1583_v10 = vsel %vm443_vm2, %v1579_v46, %v1582_v41  ;;  %v1829_v63 = vsel %vm934_vm4, %v1826_v34, %v1828_v36  ;;  %v2396_v40 = vshrl.u32 %v4504_v45, 16  ;;  %v2394_v44 = vrot.slane %v2392_v31, 1 }
  0x79   : > { %v1591_v6 = vsel %vm443_vm2, %v1586_v47, %v1590_v48  ;;  %v1594_v58 = vor.u32 %v1592_v33, %v1590_v48 }
  0x7a   : > { %v2398_v51 = vor.u32 %v2396_v40, %v2394_v44 }
  0x7d   : > { %3759 = vmatmul.mubr.msk.bf16.gmra.mxu1 %vm555_vm3, %v4377_v42  ;;  %v1830_v42 = vrot.slane %v4401_v4, 1 }
  0x7e   : > { %3785 = vmatmul.mubr.msk.bf16.gmra.mxu0 %vm555_vm3, %v1527_v57  ;;  %3762 = vmatprep.mubr.msk.bf16.mxu1 %vm555_vm3, %v4391_v53  ;;  %v4482_v57 = vld [vmem:[%s4288_s30 + $0x4] sm:$0xf]  ;;  %v1832_v53 = vrot.slane %v4411_v59, 1 }
  0x7f   : > { %3788 = vmatprep.mubr.msk.bf16.mxu0 %vm555_vm3, %v1534_v12  ;;  %v1822_v12 = vrot.slane %v4350_v23, 1  ;;  %v4488_v21 = vcombine.low %v2060_v56, %v4482_v57  ;;  %v4500_v23 = vld [vmem:[%s4288_s30 + $0x8] sm:$0xff]   ;;  %v3451_v32 = vcombine.low %v2693_v24, %v4482_v57 }
  0x80   : > { %v1833_v2 = vsel %vm934_vm4, %v1830_v42, %v1832_v53  ;;  %v2700_v47 = vrot.slane %v4500_v23, 1 }
  0x81   : > { %v1823_v35 = vsel %vm934_vm4, %v1820_v8, %v1822_v12  ;;  %v1825_v60 = vsel %vm934_vm4, %v1822_v12, %v1824_v43  ;;  %v2381_v15 = vshll.u32 %v4488_v21, 16  ;;  %v2379_v22 = vshrl.u32 %v4488_v21, 16 }
  0x82   : > { %v2699_v46 = vrot.slane %v3451_v32, 1  ;;  %v2702_v12 = vrot.slane %v4504_v45, 1  ;;  %v2434_v32 = vshll.u32 %v4553_v9, 16 }
  0x83   : > { %v2383_v3 = vrot.slane %v2381_v15, 1 }
  0x85   : > { %3763 = vmatmul.mubr.msk.bf16.gmra.mxu1 %vm555_vm3, %v4401_v4  ;;  %v4533_v4 = vld [vmem:[%s4288_s30 + $0x28] sm:$0xff]  }
  0x86   : > { %3789 = vmatmul.mubr.msk.bf16.gmra.mxu0 %vm555_vm3, %v1541_v55  ;;  %3766 = vmatprep.mubr.msk.bf16.mxu1 %vm555_vm3, %v4411_v59  ;;  %v4521_v55 = vld [vmem:[%s4288_s30 + $0x20] sm:$0xff]   ;;  %v1836_v59 = vrot.slane %v4429_v5, 1 }
  0x87   : > { %3792 = vmatprep.mubr.msk.bf16.mxu0 %vm555_vm3, %v1548_v0  ;;  %v1834_v0 = vrot.slane %v4419_v61, 1  ;;  %v2410_v8 = vshrl.u32 %v4521_v55, 16 }
  0x88   : > { %v1839_v13 = vsel %vm934_vm4, %v1836_v59, %v1838_v7 }
  0x89   : > { %v1835_v19 = vsel %vm934_vm4, %v1832_v53, %v1834_v0  ;;  %v1837_v20 = vsel %vm934_vm4, %v1834_v0, %v1836_v59  ;;  %v2420_v53 = vshll.u32 %v4537_v1, 16  ;;  %v2417_v0 = vshrl.u32 %v4533_v4, 16 }
  0x8b   : > { %v2422_v15 = vrot.slane %v2420_v53, 1  ;;  %v2714_v53 = vrot.slane %v4553_v9, 1 }
  0x8d   : > { %3767 = vmatmul.mubr.msk.bf16.gmra.mxu1 %vm555_vm3, %v4419_v61  ;;  %v4549_v61 = vld [vmem:[%s4288_s30 + $0x38] sm:$0xff]  }
  0x8e   : > { %3793 = vmatmul.mubr.msk.bf16.gmra.mxu0 %vm555_vm3, %v1555_v14  ;;  %3770 = vmatprep.mubr.msk.bf16.mxu1 %vm555_vm3, %v4429_v5  ;;  %v1840_v5 = vrot.slane %v4447_v50, 1  ;;  %v1842_v14 = vrot.slane %v4453_v26, 1  ;;  %v2384_v26 = vor.u32 %v2383_v3, %v2379_v22 }
  0x8f   : > { %3796 = vmatprep.mubr.msk.bf16.mxu0 %vm555_vm3, %v1562_v16  ;;  %v4570_v16 = vld [vmem:[%s4288_s30 + $0x50] sm:$0xff]  }
  0x90   : > { %v1841_v17 = vsel %vm934_vm4, %v1838_v7, %v1840_v5  ;;  %v1843_v18 = vsel %vm934_vm4, %v1840_v5, %v1842_v14  ;;  %v2424_v7 = vshrl.u32 %v4537_v1, 16 }
  0x95   : > { %3771 = vmatmul.mubr.msk.bf16.gmra.mxu1 %vm555_vm3, %v4437_v29  ;;  %v4565_v29 = vld [vmem:[%s4288_s30 + $0x48] sm:$0xff]  }
  0x96   : > { %3797 = vmatmul.mubr.msk.bf16.gmra.mxu0 %vm555_vm3, %v1569_v28  ;;  %3774 = vmatprep.mubr.msk.bf16.mxu1 %vm555_vm3, %v4447_v50  ;;  %v2385_v50 = vshll.u32 %v4500_v23, 16  ;;  %v4587_v28 = vld [vmem:[%s4288_s30 + $0x60] sm:$0xff]  }
  0x97   : > { %3800 = vmatprep.mubr.msk.bf16.mxu0 %vm555_vm3, %v1576_v38  ;;  %v2389_v38 = vshrl.u32 %v4500_v23, 16 }
  0x98   : > { %v2387_v27 = vrot.slane %v2385_v50, 1  ;;  %v2426_v50 = vor.u32 %v2424_v7, %v2422_v15  ;;  %v2716_v7 = vrot.slane %v4565_v29, 1 }
  0x9a   : > { %v2388_v39 = vsel %vm443_vm2, %v2384_v26, %v2387_v27  ;;  %v2391_v48 = vor.u32 %v2389_v38, %v2387_v27  ;;  %v2431_v38 = vshrl.u32 %v4549_v61, 16 }
  0x9d   : > { %3775 = vmatmul.mubr.msk.bf16.gmra.mxu1 %vm555_vm3, %v3988_v54  ;;  %v2701_v54 = vsel %vm934_vm4, %v2699_v46, %v2700_v47  ;;  %v2441_v46 = vshll.u32 %v4565_v29, 16 }
  0x9e   : > { %3801 = vmatmul.mubr.msk.bf16.gmra.mxu0 %vm555_vm3, %v1583_v10  ;;  %3810 = vmatprep.mubr.msk.bf16.mxu1 %vm555_vm3, %v1819_v11  ;;  %v2395_v11 = vsel %vm443_vm2, %v2391_v48, %v2394_v44  ;;  %v2438_v44 = vshrl.u32 %v4553_v9, 16 }
  0x9f   : > { %3804 = vmatprep.mubr.msk.bf16.mxu0 %vm555_vm3, %v1591_v6  ;;  %v2406_v6 = vshll.u32 %v4521_v55, 16 }
  0xa5   : > { %3811 = vmatmul.mubr.msk.bf16.vlgmr.msra.gmra.mxu1 %vm555_vm3, %v1821_v30 }
  0xa6   : > { %3805 = vmatmul.mubr.msk.bf16.gmra.mxu0 %vm555_vm3, %v1594_v58  ;;  %3869 = vmatpush3.bf16.msra.mxu1 %v4365_v37  ;;  %v4517_v37 = vld [vmem:[%s4288_s30 + $0x18] sm:$0xff]   ;;  %v2413_v58 = vshll.u32 %v4533_v4, 16 }
  0xa7   : > { %3840 = vmatprep.mubr.msk.bf16.mxu0 %vm555_vm3, %v4488_v21  ;;  %3814 = vmatprep.mubr.msk.bf16.mxu1 %vm555_vm3, %v1823_v35  ;;  %v2399_v41 = vshll.u32 %v4517_v37, 16  ;;  %v2403_v33 = vshrl.u32 %v4517_v37, 16  ;;  %v2408_v35 = vrot.slane %v2406_v6, 1  ;;  %v2704_v43 = vrot.slane %v4517_v37, 1 }
  0xa9   : > { %v2401_v10 = vrot.slane %v2399_v41, 1 }
  0xab   : > { %v2402_v57 = vsel %vm443_vm2, %v2398_v51, %v2401_v10  ;;  %v2436_v51 = vrot.slane %v2434_v32, 1 }
  0xad   : > { %3815 = vmatmul.mubr.msk.bf16.gmra.mxu1 %vm555_vm3, %v1825_v60 }
  0xae   : > { %3841 = vmatmul.mubr.msk.bf16.vlgmr.msra.gmra.mxu0 %vm555_vm3, %v4500_v23  ;;  %3818 = vmatprep.mubr.msk.bf16.mxu1 %vm555_vm3, %v1827_v62  ;;  %v2405_v23 = vor.u32 %v2403_v33, %v2401_v10  ;;  %v2412_v62 = vor.u32 %v2410_v8, %v2408_v35  ;;  %v2712_v10 = vrot.slane %v4549_v61, 1  ;;  %v2440_v33 = vor.u32 %v2438_v44, %v2436_v51 }
  0xaf   : > { %3899 = vmatpush3.bf16.msra.mxu0 %v4387_v52  ;;  %3844 = vmatprep.mubr.msk.bf16.mxu0 %vm555_vm3, %v4504_v45  ;;  %v1831_v52 = vsel %vm934_vm4, %v1828_v36, %v1830_v42  ;;  %v2415_v36 = vrot.slane %v2413_v58, 1  ;;  %v2703_v45 = vsel %vm934_vm4, %v2700_v47, %v2702_v12  ;;  %v2710_v47 = vrot.slane %v4537_v1, 1 }
  0xb1   : > { %v2416_v59 = vsel %vm443_vm2, %v2412_v62, %v2415_v36 }
  0xb5   : > { %3819 = vmatmul.mubr.msk.bf16.gmra.mxu1 %vm555_vm3, %v1829_v63 }
  0xb6   : > { %3845 = vmatmul.mubr.msk.bf16.gmra.mxu0 %vm555_vm3, %v4517_v37  ;;  %3822 = vmatprep.mubr.msk.bf16.mxu1 %vm555_vm3, %v1831_v52  ;;  %v2705_v52 = vsel %vm934_vm4, %v2702_v12, %v2704_v43  ;;  %v2409_v37 = vsel %vm443_vm2, %v2405_v23, %v2408_v35  ;;  %v2713_v12 = vsel %vm934_vm4, %v2710_v47, %v2712_v10  ;;  %v2448_v35 = vshll.u32 %v4570_v16, 16 }
  0xb7   : > { %3848 = vmatprep.mubr.msk.bf16.mxu0 %vm555_vm3, %v4521_v55 }
  0xbd   : > { %3823 = vmatmul.mubr.msk.bf16.gmra.mxu1 %vm555_vm3, %v1833_v2 }
  0xbe   : > { %3849 = vmatmul.mubr.msk.bf16.gmra.mxu0 %vm555_vm3, %v4533_v4  ;;  %3826 = vmatprep.mubr.msk.bf16.mxu1 %vm555_vm3, %v1835_v19 }
  0xbf   : > { %3852 = vmatprep.mubr.msk.bf16.mxu0 %vm555_vm3, %v4537_v1 }
  0xc5   : > { %3827 = vmatmul.mubr.msk.bf16.gmra.mxu1 %vm555_vm3, %v1837_v20  ;;  %v2427_v20 = vshll.u32 %v4549_v61, 16 }
  0xc6   : > { %3853 = vmatmul.mubr.msk.bf16.gmra.mxu0 %vm555_vm3, %v4549_v61  ;;  %3830 = vmatprep.mubr.msk.bf16.mxu1 %vm555_vm3, %v1839_v13  ;;  %v2706_v13 = vrot.slane %v4521_v55, 1 }
  0xc7   : > { %3856 = vmatprep.mubr.msk.bf16.mxu0 %vm555_vm3, %v4553_v9  ;;  %v2429_v24 = vrot.slane %v2427_v20, 1 }
  0xc8   : > { %v2707_v55 = vsel %vm934_vm4, %v2704_v43, %v2706_v13  ;;  %v2445_v43 = vshrl.u32 %v4565_v29, 16 }
  0xc9   : > { %v2430_v41 = vsel %vm443_vm2, %v2426_v50, %v2429_v24 }
  0xcd   : > { %3831 = vmatmul.mubr.msk.bf16.gmra.mxu1 %vm555_vm3, %v1841_v17  ;;  %v2708_v17 = vrot.slane %v4533_v4, 1 }
  0xce   : > { %3857 = vmatmul.mubr.msk.bf16.gmra.mxu0 %vm555_vm3, %v4565_v29  ;;  %3834 = vmatprep.mubr.msk.bf16.mxu1 %vm555_vm3, %v1843_v18  ;;  %v2419_v18 = vor.u32 %v2417_v0, %v2415_v36  ;;  %v2717_v29 = vsel %vm934_vm4, %v2714_v53, %v2716_v7 }
  0xcf   : > { %3860 = vmatprep.mubr.msk.bf16.mxu0 %vm555_vm3, %v4570_v16  ;;  %v2709_v31 = vsel %vm934_vm4, %v2706_v13, %v2708_v17  ;;  %v2711_v1 = vsel %vm934_vm4, %v2708_v17, %v2710_v47  ;;  %v2466_v47 = vshrl.u32 %v4587_v28, 16 }
  0xd0   : > { %v2423_v4 = vsel %vm443_vm2, %v2419_v18, %v2422_v15 }
  0xd5   : > { %3835 = vmatmul.mubr.msk.bf16.gmra.mxu1 %vm555_vm3, %v1842_v14 }
  0xd6   : > { %3861 = vmatmul.mubr.msk.bf16.gmra.mxu0 %vm555_vm3, %v4584_v25  ;;  %3870 = vmatprep.mubr.msk.bf16.mxu1 %vm555_vm3, %v2388_v39 }
  0xd7   : > { %3864 = vmatprep.mubr.msk.bf16.mxu0 %vm555_vm3, %v4587_v28 }
  0xdd   : > { %v4615_v21 = vpop.f32.mrf.mxu1  ;;  %3871 = vmatmul.mubr.msk.bf16.vlgmr.msra.gmra.mxu1 %vm555_vm3, %v2395_v11 }
  0xde   : > { %v4607_v56 = vpop.f32.mrf.mxu0  ;;  %3865 = vmatmul.mubr.msk.bf16.gmra.mxu0 %vm555_vm3, %v4004_v49  ;;  %3874 = vmatprep.mubr.msk.bf16.mxu1 %vm555_vm3, %v2402_v57  ;;  %v2443_v57 = vrot.slane %v2441_v46, 1 }
  0xdf   : > { %3900 = vmatprep.mubr.msk.bf16.mxu0 %vm555_vm3, %v2701_v54  ;;  %v4622_v34 = vpop.f32.mrf.mxu1  ;;  %v2433_v54 = vor.u32 %v2431_v38, %v2429_v24  ;;  %v4712_v24 = vld [vmem:[%s4288_s30 + $0x68] ss:$0 sps:$4 sm:$0xff]  }
  0xe0   : > { %v4618_v30 = vpop.f32.mrf.mxu0  ;;  %v2444_v36 = vsel %vm443_vm2, %v2440_v33, %v2443_v57  ;;  %v2447_v13 = vor.u32 %v2445_v43, %v2443_v57 }
  0xe1   : > { %v4627_v42 = vpop.f32.mrf.mxu1  ;;  %v2437_v61 = vsel %vm443_vm2, %v2433_v54, %v2436_v51  ;;  %v2470_v51 = vshll.u32 %v4712_v24, 16 }
  0xe2   : > { %v4624_v60 = vpop.f32.mrf.mxu0 }
  0xe3   : > { %v4635_v2 = vpop.f32.mrf.mxu1 }
  0xe4   : > { %v4629_v63 = vpop.f32.mrf.mxu0 }
  0xe5   : > { %v4645_v5 = vpop.f32.mrf.mxu1  ;;  %3875 = vmatmul.mubr.msk.bf16.gmra.mxu1 %vm555_vm3, %v2409_v37 }
  0xe6   : > { %v4637_v19 = vpop.f32.mrf.mxu0  ;;  %3901 = vmatmul.mubr.msk.bf16.vlgmr.msra.gmra.mxu0 %vm555_vm3, %v2703_v45  ;;  %3878 = vmatprep.mubr.msk.bf16.mxu1 %vm555_vm3, %v2416_v59  ;;  %v2452_v45 = vshrl.u32 %v4570_v16, 16  ;;  %v2450_v59 = vrot.slane %v2448_v35, 1 }
  0xe7   : > { %3904 = vmatprep.mubr.msk.bf16.mxu0 %vm555_vm3, %v2705_v52  ;;  %v4652_v22 = vpop.f32.mrf.mxu1  ;;  %v2455_v52 = vshll.u32 %v4584_v25, 16 }
  0xe8   : > { %v4648_v14 = vpop.f32.mrf.mxu0  ;;  %v2454_v18 = vor.u32 %v2452_v45, %v2450_v59  ;;  %v2451_v38 = vsel %vm443_vm2, %v2447_v13, %v2450_v59  ;;  %v2472_v45 = vrot.slane %v2470_v51, 1 }
  0xe9   : > { %v4657_v26 = vpop.f32.mrf.mxu1  ;;  %v2457_v50 = vrot.slane %v2455_v52, 1 }
  0xea   : > { %v4654_v3 = vpop.f32.mrf.mxu0 }
  0xeb   : > { %v4665_v39 = vpop.f32.mrf.mxu1 }
  0xec   : > { %v4659_v27 = vpop.f32.mrf.mxu0 }
  0xed   : > { %v4675_v48 = vpop.f32.mrf.mxu1  ;;  %3879 = vmatmul.mubr.msk.bf16.gmra.mxu1 %vm555_vm3, %v2423_v4 }
  0xee   : > { %v4667_v40 = vpop.f32.mrf.mxu0  ;;  %3905 = vmatmul.mubr.msk.bf16.gmra.mxu0 %vm555_vm3, %v2707_v55  ;;  %3882 = vmatprep.mubr.msk.bf16.mxu1 %vm555_vm3, %v2430_v41  ;;  %v2715_v55 = vsel %vm934_vm4, %v2712_v10, %v2714_v53  ;;  %v2459_v41 = vshrl.u32 %v4584_v25, 16 }
  0xef   : > { %3908 = vmatprep.mubr.msk.bf16.mxu0 %vm555_vm3, %v2709_v31  ;;  %v4682_v6 = vpop.f32.mrf.mxu1 }
  0xf0   : > { %v4678_v49 = vpop.f32.mrf.mxu0 }
  0xf1   : > { %v3687_v8 = vpop.f32.mrf.mxu1 }
  0xf2   : > { %v4684_v11 = vpop.f32.mrf.mxu0  ;;  %v2720_v8 = vrot.slane %v4584_v25, 1 }
  0xf3   : > { %v4693_v23 = vpop.f32.mrf.mxu1 }
  0xf4   : > { %v4687_v58 = vpop.f32.mrf.mxu0 }
  0xf5   : > { %v3692_v37 = vpop.f32.mrf.mxu1  ;;  %3883 = vmatmul.mubr.msk.bf16.gmra.mxu1 %vm555_vm3, %v2437_v61  ;;  %v2461_v61 = vor.u32 %v2459_v41, %v2457_v50 }
  0xf6   : > { %v4695_v62 = vpop.f32.mrf.mxu0  ;;  %3909 = vmatmul.mubr.msk.bf16.gmra.mxu0 %vm555_vm3, %v2711_v1  ;;  %v827_v20 = vadd.f32 %v3692_v37, %v4607_v56  ;;  %3886 = vmatprep.mubr.msk.bf16.mxu1 %vm555_vm3, %v2444_v36  ;;  %v2462_v56 = vshll.u32 %v4587_v28, 16 }
  0xf7   : > { %3912 = vmatprep.mubr.msk.bf16.mxu0 %vm555_vm3, %v2713_v12  ;;  %v818_v15 = vpop.f32.mrf.mxu1 }
  0xf8   : > { %v4704_v0 = vpop.f32.mrf.mxu0  ;;  %v819_v9 = vadd.f32 %v818_v15, %v4618_v30  ;;  %v2458_v30 = vsel %vm443_vm2, %v2454_v18, %v2457_v50  ;;  %v2464_v1 = vrot.slane %v2462_v56, 1 }
  0xf9   : > { %v3693_v31 = vpop.f32.mrf.mxu1 }
  0xfa   : > { %v4709_v17 = vpop.f32.mrf.mxu0  ;;  %v830_v4 = vadd.f32 %v3693_v31, %v4624_v60  ;;  %v2718_v60 = vrot.slane %v4570_v16, 1  ;;  %v2468_v36 = vor.u32 %v2466_v47, %v2464_v1  ;;  %v2465_v13 = vsel %vm443_vm2, %v2461_v61, %v2464_v1 }
  0xfb   : > { %v821_v44 = vpop.f32.mrf.mxu1  ;;  %v2474_v31 = vshrl.u32 %v4712_v24, 16 }
  0xfc   : > { %v4716_v32 = vpop.f32.mrf.mxu0  ;;  %v822_v10 = vadd.f32 %v821_v44, %v4629_v63  ;;  %v2719_v53 = vsel %vm934_vm4, %v2716_v7, %v2718_v60  ;;  %v2721_v25 = vsel %vm934_vm4, %v2718_v60, %v2720_v8  ;;  %v2722_v7 = vrot.slane %v4587_v28, 1 }
  0xfd   : > { %v3696_v33 = vpop.f32.mrf.mxu1  ;;  %3887 = vmatmul.mubr.msk.bf16.gmra.mxu1 %vm555_vm3, %v2451_v38  ;;  %v2476_v47 = vor.u32 %v2474_v31, %v2472_v45 }
  0xfe   : > { %v3722_v46 = vpop.f32.mrf.mxu0  ;;  %3913 = vmatmul.mubr.msk.bf16.gmra.mxu0 %vm555_vm3, %v2715_v55  ;;  %v843_v12 = vadd.f32 %v3696_v33, %v4637_v19  ;;  %3890 = vmatprep.mubr.msk.bf16.mxu1 %vm555_vm3, %v2458_v30  ;;  %v2723_v28 = vsel %vm934_vm4, %v2720_v8, %v2722_v7 }
  0xff   : > { %v4728_v54 = vadd.f32 %v3722_v46, %v827_v20  ;;  %3916 = vmatprep.mubr.msk.bf16.mxu0 %vm555_vm3, %v2717_v29  ;;  %v834_v63 = vpop.f32.mrf.mxu1  ;;  %v2724_v29 = vrot.slane %v4712_v24, 1 }
 0x100   : > { %v1041_v57 = vpop.f32.mrf.mxu0  ;;  %v835_v16 = vadd.f32 %v834_v63, %v4648_v14  ;;  %v2473_v14 = vsel %vm443_vm2, %v2468_v36, %v2472_v45 }
 0x101   : > { %v4735_v35 = vadd.f32 %v1041_v57, %v819_v9  ;;  %v3697_v37 = vpop.f32.mrf.mxu1  ;;  %v2725_v51 = vsel %vm934_vm4, %v2722_v7, %v2724_v29 }
 0x102   : > { %v3723_v43 = vpop.f32.mrf.mxu0  ;;  %v846_v19 = vadd.f32 %v3697_v37, %v4654_v3 }
 0x103   : > { %v4739_v52 = vadd.f32 %v3723_v43, %v830_v4  ;;  %v837_v15 = vpop.f32.mrf.mxu1 }
 0x104   : > { %v1044_v59 = vpop.f32.mrf.mxu0  ;;  %v838_v50 = vadd.f32 %v837_v15, %v4659_v27 }
 0x105   : > { %v4744_v20 = vadd.f32 %v1044_v59, %v822_v10  ;;  %v3700_v55 = vpop.f32.mrf.mxu1  ;;  %3891 = vmatmul.mubr.msk.bf16.gmra.mxu1 %vm555_vm3, %v2465_v13 }
 0x106   : > { %v3726_v18 = vpop.f32.mrf.mxu0  ;;  %3917 = vmatmul.mubr.msk.bf16.gmra.mxu0 %vm555_vm3, %v2719_v53  ;;  %v859_v56 = vadd.f32 %v3700_v55, %v4667_v40  ;;  %3894 = vmatprep.mubr.msk.bf16.mxu1 %vm555_vm3, %v2473_v14 }
 0x107   : > { %v4750_v9 = vadd.f32 %v3726_v18, %v843_v12  ;;  %3920 = vmatprep.mubr.msk.bf16.mxu0 %vm555_vm3, %v2721_v25  ;;  %v850_v27 = vpop.f32.mrf.mxu1 }
 0x108   : > { %v1057_v3 = vpop.f32.mrf.mxu0  ;;  %v851_v41 = vadd.f32 %v850_v27, %v4678_v49 }
 0x109   : > { %v4758_v4 = vadd.f32 %v1057_v3, %v835_v16  ;;  %v3701_v46 = vpop.f32.mrf.mxu1 }
 0x10a   : > { %v3727_v38 = vpop.f32.mrf.mxu0  ;;  %v862_v24 = vadd.f32 %v3701_v46, %v4684_v11 }
 0x10b   : > { %v4762_v44 = vadd.f32 %v3727_v38, %v846_v19  ;;  %v853_v10 = vpop.f32.mrf.mxu1 }
 0x10c   : > { %v1060_v30 = vpop.f32.mrf.mxu0  ;;  %v854_v33 = vadd.f32 %v853_v10, %v4687_v58 }
 0x10d   : > { %v4767_v40 = vadd.f32 %v1060_v30, %v838_v50  ;;  %v3704_v57 = vpop.f32.mrf.mxu1  ;;  %3895 = vmatmul.mubr.msk.bf16.gmra.mxu1 %vm555_vm3, %v2476_v47 }
 0x10e   : > { %v3730_v60 = vpop.f32.mrf.mxu0  ;;  %3921 = vmatmul.mubr.msk.bf16.gmra.mxu0 %vm555_vm3, %v2723_v28  ;;  %v875_v8 = vadd.f32 %v3704_v57, %v4695_v62 }
 0x10f   : > { %v4771_v49 = vadd.f32 %v3730_v60, %v859_v56  ;;  %3924 = vmatprep.mubr.msk.bf16.mxu0 %vm555_vm3, %v2725_v51  ;;  %v866_v11 = vpop.f32.mrf.mxu1 }
 0x110   : > { %v1073_v1 = vpop.f32.mrf.mxu0  ;;  %v867_v63 = vadd.f32 %v866_v11, %v4704_v0 }
 0x111   : > { %v4776_v12 = vadd.f32 %v1073_v1, %v851_v41  ;;  %v3705_v36 = vpop.f32.mrf.mxu1 }
 0x112   : > { %v3731_v61 = vpop.f32.mrf.mxu0  ;;  %v878_v45 = vadd.f32 %v3705_v36, %v4709_v17 }
 0x113   : > { %v4779_v43 = vadd.f32 %v3731_v61, %v862_v24  ;;  %v869_v53 = vpop.f32.mrf.mxu1 }
 0x114   : > { %v1076_v58 = vpop.f32.mrf.mxu0  ;;  %v870_v62 = vadd.f32 %v869_v53, %v4716_v32 }
 0x115   : > { %v4782_v16 = vadd.f32 %v1076_v58, %v854_v33  ;;  %v3708_v25 = vpop.f32.mrf.mxu1 }
 0x116   : > { %v3734_v37 = vpop.f32.mrf.mxu0  ;;  %3925 = vmatmul.mubr.msk.bf16.gmra.mxu0 %vm555_vm3, %v2724_v29  ;;  %v891_v0 = vadd.f32 %v3708_v25, %v4615_v21 }
 0x117   : > { %v4786_v59 = vadd.f32 %v3734_v37, %v875_v8  ;;  %v882_v15 = vpop.f32.mrf.mxu1 }
 0x118   : > { %v1089_v19 = vpop.f32.mrf.mxu0  ;;  %v883_v17 = vadd.f32 %v882_v15, %v4622_v34 }
 0x119   : > { %v4789_v13 = vadd.f32 %v1089_v19, %v867_v63  ;;  %v3709_v50 = vpop.f32.mrf.mxu1 }
 0x11a   : > { %v3735_v18 = vpop.f32.mrf.mxu0  ;;  %v894_v55 = vadd.f32 %v3709_v50, %v4627_v42 }
 0x11b   : > { %v4792_v14 = vadd.f32 %v3735_v18, %v878_v45  ;;  %v885_v32 = vpop.f32.mrf.mxu1 }
 0x11c   : > { %v1092_v7 = vpop.f32.mrf.mxu0  ;;  %v886_v29 = vadd.f32 %v885_v32, %v4635_v2 }
 0x11d   : > { %v4795_v3 = vadd.f32 %v1092_v7, %v870_v62  ;;  %v3712_v21 = vpop.f32.mrf.mxu1 }
 0x11e   : > { %v3738_v31 = vpop.f32.mrf.mxu0  ;;  %v907_v38 = vadd.f32 %v3712_v21, %v4645_v5 }
 0x11f   : > { %v4798_v56 = vadd.f32 %v3738_v31, %v891_v0  ;;  %v898_v34 = vpop.f32.mrf.mxu1 }
 0x120   : > { %v1105_v27 = vpop.f32.mrf.mxu0  ;;  %v899_v46 = vadd.f32 %v898_v34, %v4652_v22 }
 0x121   : > { %v4801_v41 = vadd.f32 %v1105_v27, %v883_v17  ;;  %v3713_v42 = vpop.f32.mrf.mxu1 }
 0x122   : > { %v3739_v28 = vpop.f32.mrf.mxu0  ;;  %v910_v51 = vadd.f32 %v3713_v42, %v4657_v26 }
 0x123   : > { %v4804_v30 = vadd.f32 %v3739_v28, %v894_v55  ;;  %v901_v2 = vpop.f32.mrf.mxu1 }
 0x124   : > { %v1108_v47 = vpop.f32.mrf.mxu0  ;;  %v902_v60 = vadd.f32 %v901_v2, %v4665_v39 }
 0x125   : > { %v4807_v24 = vadd.f32 %v1108_v47, %v886_v29  ;;  %v3716_v5 = vpop.f32.mrf.mxu1 }
 0x126   : > { %v3742_v10 = vpop.f32.mrf.mxu0  ;;  %v923_v1 = vadd.f32 %v3716_v5, %v4675_v48 }
 0x127   : > { %v4810_v33 = vadd.f32 %v3742_v10, %v907_v38  ;;  %v914_v22 = vpop.f32.mrf.mxu1 }
 0x128   : > { %v1121_v57 = vpop.f32.mrf.mxu0  ;;  %v915_v61 = vadd.f32 %v914_v22, %v4682_v6 }
 0x129   : > { %v4813_v8 = vadd.f32 %v1121_v57, %v899_v46  ;;  %v3717_v26 = vpop.f32.mrf.mxu1 }
 0x12a   : > { %v3743_v11 = vpop.f32.mrf.mxu0 }
 0x12b   : > { %v4816_v63 = vadd.f32 %v3743_v11, %v910_v51  ;;  %v917_v45 = vpop.f32.mrf.mxu1 }
 0x12c   : > { %v1124_v36 = vpop.f32.mrf.mxu0  ;;  %v918_v53 = vadd.f32 %v917_v45, %v4693_v23 }
 0x12d   : > { %v4818_v58 = vadd.f32 %v1124_v36, %v902_v60  ;;  %v3752_v62 = vpop.f32.mrf.mxu1 }
 0x12e   : > { %v3746_v39 = vpop.f32.mrf.mxu0  ;;  %v1466_v25 = vadd.f32 %v3752_v62, %v4728_v54 }
 0x12f   : > { %v4821_v37 = vadd.f32 %v3746_v39, %v923_v1  ;;  %v1354_v0 = vpop.f32.mrf.mxu1 }
 0x130   : > { %v1137_v48 = vpop.f32.mrf.mxu0  ;;  %v1464_v15 = vadd.f32 %v1354_v0, %v4735_v35 }
 0x131   : > { %v4824_v19 = vadd.f32 %v1137_v48, %v915_v61  ;;  %v3753_v18 = vpop.f32.mrf.mxu1 }
 0x132   : > { %v3747_v6 = vpop.f32.mrf.mxu0  ;;  %v1467_v50 = vadd.f32 %v3753_v18, %v4739_v52 }
 0x133   : > { %v1357_v55 = vpop.f32.mrf.mxu1 }
 0x134   : > { %v1140_v17 = vpop.f32.mrf.mxu0  ;;  %v1465_v32 = vadd.f32 %v1357_v55, %v4744_v20 }
 0x135   : > { %v4828_v7 = vadd.f32 %v1140_v17, %v918_v53  ;;  %v3756_v29 = vpop.f32.mrf.mxu1 }
 0x136   : > { %v3782_v23 = vpop.f32.mrf.mxu0  ;;  %v1470_v21 = vadd.f32 %v3756_v29, %v4750_v9 }
 0x137   : > { %v4831_v31 = vadd.f32 %v3782_v23, %v1466_v25  ;;  %v1370_v38 = vpop.f32.mrf.mxu1 }
 0x138   : > { %v1674_v54 = vpop.f32.mrf.mxu0  ;;  %v1468_v34 = vadd.f32 %v1370_v38, %v4758_v4 }
 0x139   : > { %v4834_v27 = vadd.f32 %v1674_v54, %v1464_v15  ;;  %v3757_v52 = vpop.f32.mrf.mxu1 }
 0x13a   : > { %v3783_v35 = vpop.f32.mrf.mxu0  ;;  %v1471_v42 = vadd.f32 %v3757_v52, %v4762_v44 }
 0x13b   : > { %v4837_v28 = vadd.f32 %v3783_v35, %v1467_v50  ;;  %v1373_v20 = vpop.f32.mrf.mxu1 }
 0x13c   : > { %v1677_v46 = vpop.f32.mrf.mxu0  ;;  %v1469_v2 = vadd.f32 %v1373_v20, %v4767_v40 }
 0x13d   : > { %v4840_v47 = vadd.f32 %v1677_v46, %v1465_v32  ;;  %v3760_v9 = vpop.f32.mrf.mxu1 }
 0x13e   : > { %v3786_v51 = vpop.f32.mrf.mxu0  ;;  %v1474_v5 = vadd.f32 %v3760_v9, %v4771_v49 }
 0x13f   : > { %v4843_v10 = vadd.f32 %v3786_v51, %v1470_v21  ;;  %v1386_v4 = vpop.f32.mrf.mxu1 }
 0x140   : > { %v1690_v60 = vpop.f32.mrf.mxu0  ;;  %v1472_v22 = vadd.f32 %v1386_v4, %v4776_v12 }
 0x141   : > { %v4846_v57 = vadd.f32 %v1690_v60, %v1468_v34  ;;  %v3761_v44 = vpop.f32.mrf.mxu1 }
 0x142   : > { %v3787_v1 = vpop.f32.mrf.mxu0  ;;  %v1475_v26 = vadd.f32 %v3761_v44, %v4779_v43 }
 0x143   : > { %v4849_v11 = vadd.f32 %v3787_v1, %v1471_v42  ;;  %v1389_v40 = vpop.f32.mrf.mxu1 }
 0x144   : > { %v1693_v61 = vpop.f32.mrf.mxu0  ;;  %v1473_v39 = vadd.f32 %v1389_v40, %v4782_v16 }
 0x145   : > { %v4852_v36 = vadd.f32 %v1693_v61, %v1469_v2  ;;  %v3764_v49 = vpop.f32.mrf.mxu1 }
 0x146   : > { %v3790_v45 = vpop.f32.mrf.mxu0  ;;  %v1478_v48 = vadd.f32 %v3764_v49, %v4786_v59 }
 0x147   : > { %v4855_v53 = vadd.f32 %v3790_v45, %v1474_v5  ;;  %v1402_v12 = vpop.f32.mrf.mxu1 }
 0x148   : > { %v1706_v62 = vpop.f32.mrf.mxu0  ;;  %v1476_v6 = vadd.f32 %v1402_v12, %v4789_v13 }
 0x149   : > { %v4858_v25 = vadd.f32 %v1706_v62, %v1472_v22  ;;  %v3765_v43 = vpop.f32.mrf.mxu1 }
 0x14a   : > { %v3791_v0 = vpop.f32.mrf.mxu0  ;;  %v1479_v17 = vadd.f32 %v3765_v43, %v4792_v14 }
 0x14b   : > { %v4861_v15 = vadd.f32 %v3791_v0, %v1475_v26  ;;  %v1405_v16 = vpop.f32.mrf.mxu1 }
 0x14c   : > { %v1709_v18 = vpop.f32.mrf.mxu0  ;;  %v1477_v23 = vadd.f32 %v1405_v16, %v4795_v3 }
 0x14d   : > { %v4864_v50 = vadd.f32 %v1709_v18, %v1473_v39  ;;  %v3768_v59 = vpop.f32.mrf.mxu1 }
 0x14e   : > { %v3794_v55 = vpop.f32.mrf.mxu0  ;;  %v1482_v54 = vadd.f32 %v3768_v59, %v4798_v56 }
 0x14f   : > { %v4867_v32 = vadd.f32 %v3794_v55, %v1478_v48  ;;  %v1418_v13 = vpop.f32.mrf.mxu1 }
 0x150   : > { %v1722_v29 = vpop.f32.mrf.mxu0  ;;  %v1480_v35 = vadd.f32 %v1418_v13, %v4801_v41 }
 0x151   : > { %v4870_v21 = vadd.f32 %v1722_v29, %v1476_v6  ;;  %v3769_v14 = vpop.f32.mrf.mxu1 }
 0x152   : > { %v3795_v38 = vpop.f32.mrf.mxu0  ;;  %v1483_v46 = vadd.f32 %v3769_v14, %v4804_v30 }
 0x153   : > { %v4873_v34 = vadd.f32 %v3795_v38, %v1479_v17  ;;  %v1421_v3 = vpop.f32.mrf.mxu1 }
 0x154   : > { %v1725_v52 = vpop.f32.mrf.mxu0  ;;  %v1481_v51 = vadd.f32 %v1421_v3, %v4807_v24 }
 0x155   : > { %v4876_v42 = vadd.f32 %v1725_v52, %v1477_v23  ;;  %v3772_v56 = vpop.f32.mrf.mxu1 }
 0x156   : > { %v3798_v20 = vpop.f32.mrf.mxu0  ;;  %v1486_v60 = vadd.f32 %v3772_v56, %v4810_v33 }
 0x157   : > { %v4879_v2 = vadd.f32 %v3798_v20, %v1482_v54  ;;  %v1434_v41 = vpop.f32.mrf.mxu1 }
 0x158   : > { %v1738_v9 = vpop.f32.mrf.mxu0  ;;  %v1484_v1 = vadd.f32 %v1434_v41, %v4813_v8 }
 0x159   : > { %v4882_v5 = vadd.f32 %v1738_v9, %v1480_v35  ;;  %v3773_v30 = vpop.f32.mrf.mxu1 }
 0x15a   : > { %v3799_v4 = vpop.f32.mrf.mxu0  ;;  %v1487_v61 = vadd.f32 %v3773_v30, %v4816_v63 }
 0x15b   : > { %v4885_v22 = vadd.f32 %v3799_v4, %v1483_v46  ;;  %v1437_v24 = vpop.f32.mrf.mxu1 }
 0x15c   : > { %v1741_v44 = vpop.f32.mrf.mxu0  ;;  %v1485_v45 = vadd.f32 %v1437_v24, %v4818_v58 }
 0x15d   : > { %5193 = vst [vmem:[#allocation2_spill] sm:$0xff] %v4885_v22  ;;  %v4888_v26 = vadd.f32 %v1741_v44, %v1481_v51  ;;  %v3776_v33 = vpop.f32.mrf.mxu1 }
 0x15e   : > { %v3802_v40 = vpop.f32.mrf.mxu0  ;;  %v1490_v62 = vadd.f32 %v3776_v33, %v4821_v37 }
 0x15f   : > { %5194 = vst [vmem:[#allocation3_spill] sm:$0xff] %v4888_v26  ;;  %v4891_v39 = vadd.f32 %v3802_v40, %v1486_v60  ;;  %v1450_v8 = vpop.f32.mrf.mxu1 }
 0x160   : > { %v1754_v49 = vpop.f32.mrf.mxu0  ;;  %v1488_v0 = vadd.f32 %v1450_v8, %v4824_v19 }
 0x161   : > { %5195 = vst [vmem:[#allocation4_spill] sm:$0xff] %v4891_v39  ;;  %v4894_v48 = vadd.f32 %v1754_v49, %v1484_v1  ;;  %v3777_v63 = vpop.f32.mrf.mxu1 }
 0x162   : > { %v3803_v12 = vpop.f32.mrf.mxu0 }
 0x163   : > { %5196 = vst [vmem:[#allocation5_spill] sm:$0xff] %v4894_v48  ;;  %v4897_v6 = vadd.f32 %v3803_v12, %v1487_v61  ;;  %v1453_v17 = vpop.f32.mrf.mxu1 }
 0x164   : > { %v1757_v43 = vpop.f32.mrf.mxu0  ;;  %v1489_v16 = vadd.f32 %v1453_v17, %v4828_v7 }
 0x165   : > { %5197 = vst [vmem:[#allocation6_spill] sm:$0xff] %v4897_v6  ;;  %v4899_v18 = vadd.f32 %v1757_v43, %v1485_v45  ;;  %v3812_v23 = vpop.f32.mrf.mxu1 }
 0x166   : > { %v3806_v58 = vpop.f32.mrf.mxu0 }
 0x167   : > { %5198 = vst [vmem:[#allocation7_spill] sm:$0xff] %v4899_v18  ;;  %v4902_v55 = vadd.f32 %v3806_v58, %v1490_v62  ;;  %v1923_v29 = vpop.f32.mrf.mxu1 }
 0x168   : > { %v1770_v37 = vpop.f32.mrf.mxu0 }
 0x169   : > { %5199 = vst [vmem:[#allocation8_spill] sm:$0xff] %v4902_v55  ;;  %v4904_v59 = vadd.f32 %v1770_v37, %v1488_v0  ;;  %v4906_v13 = vpop.f32.mrf.mxu1 }
 0x16a   : > { %v3807_v54 = vpop.f32.mrf.mxu0 }
 0x16b   : > { %5200 = vst [vmem:[#allocation9_spill] sm:$0xff] %v4904_v59  ;;  %v4910_v35 = vpop.f32.mrf.mxu1 }
 0x16c   : > { %v1773_v19 = vpop.f32.mrf.mxu0 }
 0x16d   : > { %v4908_v38 = vadd.f32 %v1773_v19, %v1489_v16  ;;  %v4912_v52 = vpop.f32.mrf.mxu1 }
 0x16e   : > { %v3842_v14 = vpop.f32.mrf.mxu0 }
 0x16f   : > { %5201 = vst [vmem:[#allocation10_spill] sm:$0xff] %v4908_v38  ;;  %v4914_v7 = vpop.f32.mrf.mxu1 }
 0x170   : > { %v2236_v46 = vpop.f32.mrf.mxu0 }
 0x171   : > { %v4916_v20 = vpop.f32.mrf.mxu1 }
 0x172   : > { %v3843_v3 = vpop.f32.mrf.mxu0 }
 0x173   : > { %v4920_v56 = vpop.f32.mrf.mxu1 }
 0x174   : > { %v4918_v51 = vpop.f32.mrf.mxu0 }
 0x175   : > { %v4924_v60 = vpop.f32.mrf.mxu1 }
 0x176   : > { %v4922_v9 = vpop.f32.mrf.mxu0 }
 0x177   : > { %v4928_v4 = vpop.f32.mrf.mxu1 }
 0x178   : > { %v4926_v41 = vpop.f32.mrf.mxu0 }
 0x179   : > { %v4932_v30 = vpop.f32.mrf.mxu1 }
 0x17a   : > { %v4930_v1 = vpop.f32.mrf.mxu0 }
 0x17b   : > { %v4936_v61 = vpop.f32.mrf.mxu1 }
 0x17c   : > { %v4934_v44 = vpop.f32.mrf.mxu0 }
 0x17d   : > { %v4940_v40 = vpop.f32.mrf.mxu1 }
 0x17e   : > { %v4938_v24 = vpop.f32.mrf.mxu0 }
 0x17f   : > { %v4944_v33 = vpop.f32.mrf.mxu1 }
 0x180   : > { %v4942_v45 = vpop.f32.mrf.mxu0 }
 0x181   : > { %v4948_v62 = vpop.f32.mrf.mxu1 }
 0x182   : > { %v4946_v49 = vpop.f32.mrf.mxu0 }
 0x183   : > { %v4952_v12 = vpop.f32.mrf.mxu1 }
 0x184   : > { %v4950_v8 = vpop.f32.mrf.mxu0 }
 0x185   : > { %v4956_v63 = vpop.f32.mrf.mxu1 }
 0x186   : > { %v4954_v0 = vpop.f32.mrf.mxu0 }
 0x187   : > { %v4960_v17 = vpop.f32.mrf.mxu1 }
 0x188   : > { %v4958_v43 = vpop.f32.mrf.mxu0 }
 0x189   : > { %v4964_v16 = vpop.f32.mrf.mxu1 }
 0x18a   : > { %v4962_v58 = vpop.f32.mrf.mxu0  ;;  %5202 = vst [vmem:[#allocation11_spill] sm:$0xff] %v4964_v16 }
 0x18b   : > { %v4968_v54 = vpop.f32.mrf.mxu1 }
 0x18c   : > { %v4966_v37 = vpop.f32.mrf.mxu0  ;;  %5204 = vst [vmem:[#allocation13_spill] sm:$0xff] %v4968_v54 }
 0x18d   : > { %5203 = vst [vmem:[#allocation12_spill] sm:$0xff] %v4966_v37  ;;  %v4972_v38 = vpop.f32.mrf.mxu1 }
 0x18e   : > { %v4970_v19 = vpop.f32.mrf.mxu0  ;;  %5206 = vst [vmem:[#allocation15_spill] sm:$0xff] %v4972_v38 }
 0x18f   : > { %5205 = vst [vmem:[#allocation14_spill] sm:$0xff] %v4970_v19  ;;  %v4976_v55 = vpop.f32.mrf.mxu1 }
 0x190   : > { %v4974_v59 = vpop.f32.mrf.mxu0  ;;  %5208 = vst [vmem:[#allocation17_spill] sm:$0xff] %v4976_v55 }
 0x191   : > { %5207 = vst [vmem:[#allocation16_spill] sm:$0xff] %v4974_v59  ;;  %v4980_v6 = vpop.f32.mrf.mxu1 }
 0x192   : > { %v4978_v18 = vpop.f32.mrf.mxu0  ;;  %5210 = vst [vmem:[#allocation19_spill] sm:$0xff] %v4980_v6 }
 0x193   : > { %5209 = vst [vmem:[#allocation18_spill] sm:$0xff] %v4978_v18  ;;  %v4984_v39 = vpop.f32.mrf.mxu1 }
 0x194   : > { %v4982_v48 = vpop.f32.mrf.mxu0  ;;  %5212 = vst [vmem:[#allocation21_spill] sm:$0xff] %v4984_v39 }
 0x195   : > { %5211 = vst [vmem:[#allocation20_spill] sm:$0xff] %v4982_v48  ;;  %v4988_v54 = vpop.f32.mrf.mxu1 }
 0x196   : > { %v4986_v26 = vpop.f32.mrf.mxu0  ;;  %5214 = vst [vmem:[#allocation23_spill] sm:$0xff] %v4988_v54  ;;  %v2035_v54 = vadd.f32 %v3812_v23, %v4831_v31  ;;  %v5017_v31 = vld [vmem:[%s5190_s4] ss:$0 sm:$0xff] }
 0x197   : > { %5213 = vst [vmem:[#allocation22_spill] sm:$0xff] %v4986_v26  ;;  %v4992_v38 = vpop.f32.mrf.mxu1 }
 0x198   : > { %v4990_v16 = vpop.f32.mrf.mxu0  ;;  %5216 = vst [vmem:[#allocation25_spill] sm:$0xff] %v4992_v38  ;;  %v2033_v38 = vadd.f32 %v1923_v29, %v4834_v27  ;;  %v2348_v19 = vadd.f32 %v3842_v14, %v2035_v54  ;;  %v2034_v14 = vadd.f32 %v4910_v35, %v4840_v47 }
 0x199   : > { %5215 = vst [vmem:[#allocation24_spill] sm:$0xff] %v4990_v16  ;;  %v3837_v55 = vpop.f32.mrf.mxu1 }
 0x19a   : > { %v4994_v59 = vpop.f32.mrf.mxu0  ;;  %v2036_v55 = vadd.f32 %v4906_v13, %v4837_v28  ;;  %v2039_v28 = vadd.f32 %v4912_v52, %v4843_v10  ;;  %v2040_v10 = vadd.f32 %v4916_v20, %v4849_v11 }
 0x19b   : > { %5217 = vst [vmem:[#allocation26_spill] sm:$0xff] %v4994_v59  ;;  %v4998_v18 = vpop.f32.mrf.mxu1 }
 0x19c   : > { %v4996_v22 = vpop.f32.mrf.mxu0  ;;  %5219 = vst [vmem:[#allocation28_spill] sm:$0xff] %v4998_v18  ;;  %v2346_v18 = vadd.f32 %v2236_v46, %v2033_v38  ;;  %v2349_v27 = vadd.f32 %v3843_v3, %v2036_v55  ;;  %v2037_v46 = vadd.f32 %v4914_v7, %v4846_v57  ;;  %v2347_v3 = vadd.f32 %v4918_v51, %v2034_v14 }
 0x19d   : > { %5218 = vst [vmem:[#allocation27_spill] sm:$0xff] %v4996_v22  ;;  %v3872_v48 = vpop.f32.mrf.mxu1  ;;  %v2353_v11 = vadd.f32 %v4930_v1, %v2040_v10 }
 0x19e   : > { %v5000_v6 = vpop.f32.mrf.mxu0  ;;  %v2350_v52 = vadd.f32 %v4926_v41, %v2037_v46 }
 0x19f   : > { %5220 = vst [vmem:[#allocation29_spill] sm:$0xff] %v5000_v6  ;;  %v2556_v26 = vpop.f32.mrf.mxu1  ;;  %v2668_v6 = vadd.f32 %v3872_v48, %v2348_v19 }
 0x1a0   : > { %v5002_v39 = vpop.f32.mrf.mxu0  ;;  %v2666_v23 = vadd.f32 %v2556_v26, %v2346_v18 }
 0x1a1   : > { %5221 = vst [vmem:[#allocation30_spill] sm:$0xff] %v5002_v39  ;;  %v3873_v37 = vpop.f32.mrf.mxu1 }
 0x1a2   : > { %v3867_v16 = vpop.f32.mrf.mxu0  ;;  %v2669_v48 = vadd.f32 %v3873_v37, %v2349_v27 }
 0x1a3   : > { %v2559_v39 = vpop.f32.mrf.mxu1 }
 0x1a4   : > { %v5007_v59 = vpop.f32.mrf.mxu0  ;;  %v2667_v37 = vadd.f32 %v2559_v39, %v2347_v3 }
 0x1a5   : > { %v3876_v16 = vpop.f32.mrf.mxu1 }
 0x1a6   : > { %v3902_v22 = vpop.f32.mrf.mxu0 }
 0x1a7   : > { %v2917_v29 = vadd.f32 %v3902_v22, %v2668_v6  ;;  %v2572_v26 = vpop.f32.mrf.mxu1  ;;  %v2352_v6 = vadd.f32 %v4922_v9, %v2039_v28 }
 0x1a8   : > { %v2805_v54 = vpop.f32.mrf.mxu0  ;;  %v2670_v27 = vadd.f32 %v2572_v26, %v2350_v52  ;;  %v2041_v26 = vadd.f32 %v4928_v4, %v4858_v25 }
 0x1a9   : > { %v2951_v13 = vadd.f32 %v5017_v31, %v2917_v29  ;;  %v2915_v38 = vadd.f32 %v2805_v54, %v2666_v23  ;;  %v3877_v57 = vpop.f32.mrf.mxu1  ;;  %v2672_v51 = vadd.f32 %v3876_v16, %v2352_v6  ;;  %v2038_v54 = vadd.f32 %v4920_v56, %v4852_v36 }
 0x1aa   : > { %v3903_v22 = vpop.f32.mrf.mxu0  ;;  %v2043_v16 = vadd.f32 %v4924_v60, %v4855_v53  ;;  %v2354_v25 = vadd.f32 %v4942_v45, %v2041_v26 }
 0x1ab   : > { %v2978_v47 = vmax.f32 %v2951_v13, 0.0  ;;  %v2949_v18 = vadd.f32 %v5017_v31, %v2915_v38  ;;  %v2918_v35 = vadd.f32 %v3903_v22, %v2669_v48  ;;  %v2575_v20 = vpop.f32.mrf.mxu1  ;;  %v2673_v13 = vadd.f32 %v3877_v57, %v2353_v11 }
 0x1ac   : > { %v2808_v7 = vpop.f32.mrf.mxu0  ;;  %v2351_v36 = vadd.f32 %v4934_v44, %v2038_v54  ;;  %v2356_v53 = vadd.f32 %v4938_v24, %v2043_v16  ;;  %v2045_v16 = vadd.f32 %v4944_v33, %v4870_v21 }
 0x1ad   : > { %v3498_v9 = vpack.c.bf16 %v2978_v47, %v2978_v47  ;;  %v2976_v19 = vmax.f32 %v2949_v18, 0.0  ;;  %v2952_v55 = vadd.f32 %v5017_v31, %v2918_v35  ;;  %v2916_v41 = vadd.f32 %v2808_v7, %v2667_v37  ;;  %v3880_v48 = vpop.f32.mrf.mxu1 }
 0x1ae   : > { %v3906_v39 = vpop.f32.mrf.mxu0  ;;  %v2044_v35 = vadd.f32 %v4932_v30, %v4861_v15  ;;  %v2671_v4 = vadd.f32 %v2575_v20, %v2351_v36  ;;  %v2676_v37 = vadd.f32 %v3880_v48, %v2356_v53  ;;  %v2042_v20 = vadd.f32 %v4936_v61, %v4864_v50 }
 0x1af   : > { %3115 = vst.msk [vmem:[%s5036_s14 + $0x8] sm:$0xf] %vm3112_vm5, %v3498_v9  ;;  %v3496_v23 = vpack.c.bf16 %v2976_v19, %v2976_v19  ;;  %v2979_v29 = vmax.f32 %v2952_v55, 0.0  ;;  %v2921_v14 = vadd.f32 %v3906_v39, %v2672_v51  ;;  %v2950_v28 = vadd.f32 %v5017_v31, %v2916_v41  ;;  %v2588_v22 = vpop.f32.mrf.mxu1 }
 0x1b0   : > { %v2821_v1 = vpop.f32.mrf.mxu0  ;;  %v2357_v51 = vadd.f32 %v4946_v49, %v2044_v35  ;;  %v2674_v15 = vadd.f32 %v2588_v22, %v2354_v25  ;;  %v2047_v41 = vadd.f32 %v4940_v40, %v4867_v32  ;;  %v2355_v50 = vadd.f32 %v4950_v8, %v2042_v20 }
 0x1b1   : > { %3113 = vst.msk [vmem:[%s5036_s14] sm:$0xf] %vm3112_vm5, %v3496_v23  ;;  %v3499_v38 = vpack.c.bf16 %v2979_v29, %v2979_v29  ;;  %v2955_v46 = vadd.f32 %v5017_v31, %v2921_v14  ;;  %v2919_v3 = vadd.f32 %v2821_v1, %v2670_v27  ;;  %v2977_v56 = vmax.f32 %v2950_v28, 0.0  ;;  %v3881_v10 = vpop.f32.mrf.mxu1 }
 0x1b2   : > { %v3907_v6 = vpop.f32.mrf.mxu0  ;;  %v2677_v23 = vadd.f32 %v3881_v10, %v2357_v51  ;;  %v2360_v32 = vadd.f32 %v4954_v0, %v2047_v41  ;;  %v2358_v21 = vadd.f32 %v4958_v43, %v2045_v16  ;;  %v2051_v35 = vadd.f32 %v4956_v63, %v4879_v2  ;;  %v5223_v2 = vld [vmem:[#allocation14_spill] sm:$0xff] }
 0x1b3   : > { %3116 = vst.msk [vmem:[%s5036_s14 + $0xc] sm:$0xf] %vm3112_vm5, %v3499_v38  ;;  %v2982_v60 = vmax.f32 %v2955_v46, 0.0  ;;  %v2953_v47 = vadd.f32 %v5017_v31, %v2919_v3  ;;  %v2922_v18 = vadd.f32 %v3907_v6, %v2673_v13  ;;  %v3497_v44 = vpack.c.bf16 %v2977_v56, %v2977_v56  ;;  %v2591_v9 = vpop.f32.mrf.mxu1 }
 0x1b4   : > { %v2824_v52 = vpop.f32.mrf.mxu0  ;;  %v2048_v38 = vadd.f32 %v4948_v62, %v4873_v34  ;;  %v2675_v33 = vadd.f32 %v2591_v9, %v2355_v50  ;;  %v2364_v63 = vadd.f32 %v5223_v2, %v2051_v35  ;;  %v5235_v35 = vld [vmem:[#allocation22_spill] sm:$0xff] }
 0x1b5   : > { %v3502_v57 = vpack.c.bf16 %v2982_v60, %v2982_v60  ;;  %v2980_v24 = vmax.f32 %v2953_v47, 0.0  ;;  %v2956_v7 = vadd.f32 %v5017_v31, %v2922_v18  ;;  %3114 = vst.msk [vmem:[%s5036_s14 + $0x4] sm:$0xf] %vm3112_vm5, %v3497_v44  ;;  %v2920_v19 = vadd.f32 %v2824_v52, %v2671_v4  ;;  %v3884_v39 = vpop.f32.mrf.mxu1 }
 0x1b6   : > { %v3910_v55 = vpop.f32.mrf.mxu0  ;;  %v2680_v26 = vadd.f32 %v3884_v39, %v2360_v32  ;;  %v2361_v22 = vadd.f32 %v4962_v58, %v2048_v38  ;;  %v2046_v18 = vadd.f32 %v4952_v12, %v4876_v42 }
 0x1b7   : > { %3119 = vst.msk [vmem:[%s5036_s14 + $0x18] sm:$0xf] %vm3112_vm5, %v3502_v57  ;;  %v3500_v30 = vpack.c.bf16 %v2980_v24, %v2980_v24  ;;  %v2983_v45 = vmax.f32 %v2956_v7, 0.0  ;;  %v2925_v11 = vadd.f32 %v3910_v55, %v2676_v37  ;;  %v2954_v49 = vadd.f32 %v5017_v31, %v2920_v19  ;;  %v2604_v28 = vpop.f32.mrf.mxu1  ;;  %v5222_v24 = vld [vmem:[#allocation12_spill] sm:$0xff] }
 0x1b8   : > { %v2837_v27 = vpop.f32.mrf.mxu0  ;;  %v2678_v34 = vadd.f32 %v2604_v28, %v2358_v21  ;;  %v2049_v57 = vadd.f32 %v4960_v17, %v4882_v5  ;;  %v2359_v42 = vadd.f32 %v5222_v24, %v2046_v18  ;;  %v5230_v21 = vld [vmem:[#allocation4_spill] sm:$0xff] }
 0x1b9   : > { %3117 = vst.msk [vmem:[%s5036_s14 + $0x10] sm:$0xf] %vm3112_vm5, %v3500_v30  ;;  %v3503_v29 = vpack.c.bf16 %v2983_v45, %v2983_v45  ;;  %v2959_v14 = vadd.f32 %v5017_v31, %v2925_v11  ;;  %v2923_v54 = vadd.f32 %v2837_v27, %v2674_v15  ;;  %v2981_v61 = vmax.f32 %v2954_v49, 0.0  ;;  %v3885_v46 = vpop.f32.mrf.mxu1  ;;  %v5224_v15 = vld [vmem:[#allocation2_spill] sm:$0xff]  ;;  %v5225_v30 = vld [vmem:[#allocation11_spill] sm:$0xff]  ;;  %v5226_v11 = vld [vmem:[#allocation16_spill] sm:$0xff] }
 0x1ba   : > { %v3911_v48 = vpop.f32.mrf.mxu0  ;;  %v2681_v44 = vadd.f32 %v3885_v46, %v2361_v22  ;;  %v2052_v45 = vadd.f32 %v5225_v30, %v5224_v15  ;;  %v2362_v5 = vadd.f32 %v5226_v11, %v2049_v57  ;;  %v5238_v57 = vld [vmem:[#allocation24_spill] sm:$0xff]  ;;  %v5240_v15 = vld [vmem:[#allocation21_spill] sm:$0xff] }
 0x1bb   : > { %3120 = vst.msk [vmem:[%s5036_s14 + $0x1c] sm:$0xf] %vm3112_vm5, %v3503_v29  ;;  %v2986_v40 = vmax.f32 %v2959_v14, 0.0  ;;  %v2957_v1 = vadd.f32 %v5017_v31, %v2923_v54  ;;  %v2926_v13 = vadd.f32 %v3911_v48, %v2677_v23  ;;  %v3501_v8 = vpack.c.bf16 %v2981_v61, %v2981_v61  ;;  %v2607_v6 = vpop.f32.mrf.mxu1  ;;  %v5227_v14 = vld [vmem:[#allocation18_spill] sm:$0xff] }
 0x1bc   : > { %v2840_v3 = vpop.f32.mrf.mxu0  ;;  %v2679_v17 = vadd.f32 %v2607_v6, %v2359_v42  ;;  %v2365_v54 = vadd.f32 %v5227_v14, %v2052_v45  ;;  %v5232_v6 = vld [vmem:[#allocation5_spill] sm:$0xff]  ;;  %v5241_v45 = vld [vmem:[#allocation26_spill] sm:$0xff] }
 0x1bd   : > { %v3506_v36 = vpack.c.bf16 %v2986_v40, %v2986_v40  ;;  %v2984_v0 = vmax.f32 %v2957_v1, 0.0  ;;  %v2960_v56 = vadd.f32 %v5017_v31, %v2926_v13  ;;  %3118 = vst.msk [vmem:[%s5036_s14 + $0x14] sm:$0xf] %vm3112_vm5, %v3501_v8  ;;  %v2924_v53 = vadd.f32 %v2840_v3, %v2675_v33  ;;  %v3888_v25 = vpop.f32.mrf.mxu1  ;;  %v5228_v1 = vld [vmem:[#allocation3_spill] sm:$0xff]  ;;  %v5229_v13 = vld [vmem:[#allocation13_spill] sm:$0xff] }
 0x1be   : > { %v3914_v60 = vpop.f32.mrf.mxu0  ;;  %v2684_v39 = vadd.f32 %v3888_v25, %v2364_v63  ;;  %v2050_v38 = vadd.f32 %v5229_v13, %v5228_v1  ;;  %v5231_v33 = vld [vmem:[#allocation15_spill] sm:$0xff]  ;;  %v5245_v13 = vld [vmem:[#allocation9_spill] sm:$0xff] }
 0x1bf   : > { %3123 = vst.msk [vmem:[%s5036_s14 + $0x28] sm:$0xf] %vm3112_vm5, %v3506_v36  ;;  %v3504_v62 = vpack.c.bf16 %v2984_v0, %v2984_v0  ;;  %v2987_v43 = vmax.f32 %v2960_v56, 0.0  ;;  %v2929_v47 = vadd.f32 %v3914_v60, %v2680_v26  ;;  %v2958_v58 = vadd.f32 %v5017_v31, %v2924_v53  ;;  %v2620_v7 = vpop.f32.mrf.mxu1  ;;  %v5233_v53 = vld [vmem:[#allocation17_spill] sm:$0xff] }
 0x1c0   : > { %v2853_v4 = vpop.f32.mrf.mxu0  ;;  %v2682_v28 = vadd.f32 %v2620_v7, %v2362_v5  ;;  %v2055_v8 = vadd.f32 %v5231_v33, %v5230_v21  ;;  %v2053_v60 = vadd.f32 %v5233_v53, %v5232_v6  ;;  %v5248_v6 = vld [vmem:[#allocation30_spill] sm:$0xff] }
 0x1c1   : > { %3121 = vst.msk [vmem:[%s5036_s14 + $0x20] sm:$0xf] %vm3112_vm5, %v3504_v62  ;;  %v3507_v10 = vpack.c.bf16 %v2987_v43, %v2987_v43  ;;  %v2963_v52 = vadd.f32 %v5017_v31, %v2929_v47  ;;  %v2927_v37 = vadd.f32 %v2853_v4, %v2678_v34  ;;  %v2985_v12 = vmax.f32 %v2958_v58, 0.0  ;;  %v3889_v41 = vpop.f32.mrf.mxu1  ;;  %v5234_v34 = vld [vmem:[#allocation20_spill] sm:$0xff] }
 0x1c2   : > { %v3915_v51 = vpop.f32.mrf.mxu0  ;;  %v2685_v36 = vadd.f32 %v3889_v41, %v2365_v54  ;;  %v2363_v62 = vadd.f32 %v5234_v34, %v2050_v38  ;;  %v2368_v58 = vadd.f32 %v5235_v35, %v2055_v8  ;;  %v2366_v24 = vadd.f32 %v5238_v57, %v2053_v60  ;;  %v5246_v38 = vld [vmem:[#allocation25_spill] sm:$0xff] }
 0x1c3   : > { %3124 = vst.msk [vmem:[%s5036_s14 + $0x2c] sm:$0xf] %vm3112_vm5, %v3507_v10  ;;  %v2990_v9 = vmax.f32 %v2963_v52, 0.0  ;;  %v2961_v19 = vadd.f32 %v5017_v31, %v2927_v37  ;;  %v2930_v55 = vadd.f32 %v3915_v51, %v2681_v44  ;;  %v3505_v20 = vpack.c.bf16 %v2985_v12, %v2985_v12  ;;  %v2623_v16 = vpop.f32.mrf.mxu1  ;;  %v5236_v10 = vld [vmem:[#allocation6_spill] sm:$0xff]  ;;  %v5237_v52 = vld [vmem:[#allocation19_spill] sm:$0xff] }
 0x1c4   : > { %v2856_v49 = vpop.f32.mrf.mxu0  ;;  %v2056_v37 = vadd.f32 %v5237_v52, %v5236_v10  ;;  %v2683_v42 = vadd.f32 %v2623_v16, %v2363_v62  ;;  %v2057_v21 = vadd.f32 %v5246_v38, %v5245_v13 }
 0x1c5   : > { %v3510_v27 = vpack.c.bf16 %v2990_v9, %v2990_v9  ;;  %v2988_v23 = vmax.f32 %v2961_v19, 0.0  ;;  %v2964_v29 = vadd.f32 %v5017_v31, %v2930_v55  ;;  %3122 = vst.msk [vmem:[%s5036_s14 + $0x24] sm:$0xf] %vm3112_vm5, %v3505_v20  ;;  %v2928_v50 = vadd.f32 %v2856_v49, %v2679_v17  ;;  %v3892_v3 = vpop.f32.mrf.mxu1  ;;  %v5239_v55 = vld [vmem:[#allocation7_spill] sm:$0xff] }
 0x1c6   : > { %v3918_v61 = vpop.f32.mrf.mxu0  ;;  %v2688_v2 = vadd.f32 %v3892_v3, %v2368_v58  ;;  %v2054_v30 = vadd.f32 %v5240_v15, %v5239_v55  ;;  %v2369_v11 = vadd.f32 %v5241_v45, %v2056_v37  ;;  %v2370_v53 = vadd.f32 %v5248_v6, %v2057_v21  ;;  %v5249_v58 = vld [vmem:[#allocation10_spill] sm:$0xff] }
 0x1c7   : > { %3127 = vst.msk [vmem:[%s5036_s14 + $0x38] sm:$0xf] %vm3112_vm5, %v3510_v27  ;;  %v3508_v48 = vpack.c.bf16 %v2988_v23, %v2988_v23  ;;  %v2991_v32 = vmax.f32 %v2964_v29, 0.0  ;;  %v2933_v40 = vadd.f32 %v3918_v61, %v2684_v39  ;;  %v2962_v46 = vadd.f32 %v5017_v31, %v2928_v50  ;;  %v2636_v47 = vpop.f32.mrf.mxu1  ;;  %v5242_v23 = vld [vmem:[#allocation27_spill] sm:$0xff] }
 0x1c8   : > { %v2869_v26 = vpop.f32.mrf.mxu0  ;;  %v2686_v41 = vadd.f32 %v2636_v47, %v2366_v24  ;;  %v2367_v29 = vadd.f32 %v5242_v23, %v2054_v30 }
 0x1c9   : > { %3125 = vst.msk [vmem:[%s5036_s14 + $0x30] sm:$0xf] %vm3112_vm5, %v3508_v48  ;;  %v3511_v0 = vpack.c.bf16 %v2991_v32, %v2991_v32  ;;  %v2967_v56 = vadd.f32 %v5017_v31, %v2933_v40  ;;  %v2931_v22 = vadd.f32 %v2869_v26, %v2682_v28  ;;  %v2989_v43 = vmax.f32 %v2962_v46, 0.0  ;;  %v3893_v7 = vpop.f32.mrf.mxu1  ;;  %v5243_v32 = vld [vmem:[#allocation8_spill] sm:$0xff]  ;;  %v5244_v40 = vld [vmem:[#allocation23_spill] sm:$0xff] }
 0x1ca   : > { %v3919_v18 = vpop.f32.mrf.mxu0  ;;  %v2689_v50 = vadd.f32 %v3893_v7, %v2369_v11  ;;  %v2059_v1 = vadd.f32 %v5244_v40, %v5243_v32 }
 0x1cb   : > { %3128 = vst.msk [vmem:[%s5036_s14 + $0x3c] sm:$0xf] %vm3112_vm5, %v3511_v0  ;;  %v2994_v25 = vmax.f32 %v2967_v56, 0.0  ;;  %v2965_v4 = vadd.f32 %v5017_v31, %v2931_v22  ;;  %v2934_v44 = vadd.f32 %v3919_v18, %v2685_v36  ;;  %v3509_v12 = vpack.c.bf16 %v2989_v43, %v2989_v43  ;;  %v2639_v5 = vpop.f32.mrf.mxu1  ;;  %v5247_v56 = vld [vmem:[#allocation29_spill] sm:$0xff] }
 0x1cc   : > { %v2872_v51 = vpop.f32.mrf.mxu0  ;;  %v2687_v3 = vadd.f32 %v2639_v5, %v2367_v29  ;;  %v2372_v22 = vadd.f32 %v5247_v56, %v2059_v1 }
 0x1cd   : > { %v3514_v63 = vpack.c.bf16 %v2994_v25, %v2994_v25  ;;  %v2992_v9 = vmax.f32 %v2965_v4, 0.0  ;;  %v2968_v19 = vadd.f32 %v5017_v31, %v2934_v44  ;;  %3126 = vst.msk [vmem:[%s5036_s14 + $0x34] sm:$0xf] %vm3112_vm5, %v3509_v12  ;;  %v2932_v17 = vadd.f32 %v2872_v51, %v2683_v42  ;;  %v3896_v54 = vpop.f32.mrf.mxu1  ;;  %v5250_v25 = vld [vmem:[#allocation28_spill] sm:$0xff] }
 0x1ce   : > { %v3922_v20 = vpop.f32.mrf.mxu0  ;;  %v2058_v4 = vadd.f32 %v5250_v25, %v5249_v58  ;;  %v2692_v44 = vadd.f32 %v3896_v54, %v2372_v22 }
 0x1cf   : > { %3131 = vst.msk [vmem:[%s5036_s14 + $0x48] sm:$0xf] %vm3112_vm5, %v3514_v63  ;;  %v3512_v49 = vpack.c.bf16 %v2992_v9, %v2992_v9  ;;  %v2995_v39 = vmax.f32 %v2968_v19, 0.0  ;;  %v2937_v27 = vadd.f32 %v3922_v20, %v2688_v2  ;;  %v2966_v14 = vadd.f32 %v5017_v31, %v2932_v17  ;;  %v2652_v8 = vpop.f32.mrf.mxu1 }
 0x1d0   : > { %v2885_v16 = vpop.f32.mrf.mxu0  ;;  %v2690_v52 = vadd.f32 %v2652_v8, %v2370_v53  ;;  %v2371_v51 = vadd.f32 %v5007_v59, %v2058_v4 }
 0x1d1   : > { %3129 = vst.msk [vmem:[%s5036_s14 + $0x40] sm:$0xf] %vm3112_vm5, %v3512_v49  ;;  %v3515_v61 = vpack.c.bf16 %v2995_v39, %v2995_v39  ;;  %v2971_v28 = vadd.f32 %v5017_v31, %v2937_v27  ;;  %v2935_v48 = vadd.f32 %v2885_v16, %v2686_v41  ;;  %v2993_v33 = vmax.f32 %v2966_v14, 0.0  ;;  %v3897_v34 = vpop.f32.mrf.mxu1 }
 0x1d2   : > { %v3923_v46 = vpop.f32.mrf.mxu0 }
 0x1d3   : > { %3132 = vst.msk [vmem:[%s5036_s14 + $0x4c] sm:$0xf] %vm3112_vm5, %v3515_v61  ;;  %v2998_v26 = vmax.f32 %v2971_v28, 0.0  ;;  %v2969_v36 = vadd.f32 %v5017_v31, %v2935_v48  ;;  %v2938_v0 = vadd.f32 %v3923_v46, %v2689_v50  ;;  %v3513_v60 = vpack.c.bf16 %v2993_v33, %v2993_v33  ;;  %v2655_v42 = vpop.f32.mrf.mxu1 }
 0x1d4   : > { %v2888_v62 = vpop.f32.mrf.mxu0  ;;  %v2691_v15 = vadd.f32 %v2655_v42, %v2371_v51 }
 0x1d5   : > { %v3518_v43 = vpack.c.bf16 %v2998_v26, %v2998_v26  ;;  %v2996_v47 = vmax.f32 %v2969_v36, 0.0  ;;  %v2972_v18 = vadd.f32 %v5017_v31, %v2938_v0  ;;  %v2936_v35 = vadd.f32 %v2888_v62, %v2687_v3  ;;  %3130 = vst.msk [vmem:[%s5036_s14 + $0x44] sm:$0xf] %vm3112_vm5, %v3513_v60 }
 0x1d6   : > { %v3926_v10 = vpop.f32.mrf.mxu0 }
 0x1d7   : > { %3135 = vst.msk [vmem:[%s5036_s14 + $0x58] sm:$0xf] %vm3112_vm5, %v3518_v43  ;;  %v3516_v37 = vpack.c.bf16 %v2996_v47, %v2996_v47  ;;  %v2999_v57 = vmax.f32 %v2972_v18, 0.0  ;;  %v2970_v24 = vadd.f32 %v5017_v31, %v2936_v35  ;;  %v2941_v12 = vadd.f32 %v3926_v10, %v2692_v44 }
 0x1d8   : > { %v2901_v7 = vpop.f32.mrf.mxu0 }
 0x1d9   : > { %3133 = vst.msk [vmem:[%s5036_s14 + $0x50] sm:$0xf] %vm3112_vm5, %v3516_v37  ;;  %v3519_v2 = vpack.c.bf16 %v2999_v57, %v2999_v57  ;;  %v2997_v63 = vmax.f32 %v2970_v24, 0.0  ;;  %v2939_v9 = vadd.f32 %v2901_v7, %v2690_v52  ;;  %v2975_v19 = vadd.f32 %v5017_v31, %v2941_v12 }
 0x1da   : > { %v3927_v55 = vpop.f32.mrf.mxu0 }
 0x1db   : > { %3136 = vst.msk [vmem:[%s5036_s14 + $0x5c] sm:$0xf] %vm3112_vm5, %v3519_v2  ;;  %v3517_v30 = vpack.c.bf16 %v2997_v63, %v2997_v63  ;;  %v2973_v45 = vadd.f32 %v5017_v31, %v2939_v9  ;;  %v3002_v11 = vmax.f32 %v2975_v19, 0.0 }
 0x1dc   : > { %v2904_v5 = vpop.f32.mrf.mxu0 }
 0x1dd   : > { %3134 = vst.msk [vmem:[%s5036_s14 + $0x54] sm:$0xf] %vm3112_vm5, %v3517_v30  ;;  %v3000_v59 = vmax.f32 %v2973_v45, 0.0  ;;  %v2940_v17 = vadd.f32 %v2904_v5, %v2691_v15  ;;  %v3522_v20 = vpack.c.bf16 %v3002_v11, %v3002_v11 }
 0x1df   : > { %v3520_v41 = vpack.c.bf16 %v3000_v59, %v3000_v59  ;;  %v2974_v49 = vadd.f32 %v5017_v31, %v2940_v17  ;;  %3140 = vst.msk [vmem:[%s5036_s14 + $0x68] sm:$0x7] %vm3139_vm6, %v3522_v20 }
 0x1e1   : > { %3137 = vst.msk [vmem:[%s5036_s14 + $0x60] sm:$0xf] %vm3112_vm5, %v3520_v41  ;;  %v3001_v39 = vmax.f32 %v2974_v49, 0.0 }
 0x1e3   : > { %v3521_v27 = vpack.c.bf16 %v3001_v39, %v3001_v39 }
 0x1e5   : > { %3138 = vst.msk [vmem:[%s5036_s14 + $0x64] sm:$0xf] %vm3112_vm5, %v3521_v27 }
 0x1e6 PF: > { %s15_s20 = sadd.s32 1, %s4029_s20   ;;  %s5251_s18 = smov %s4025_s19 }
 0x1e7   : > { %p12_p8 = scmp.ge.s32.totalorder %s15_s20, 216   ;;  %s5252_s19 = smov %s5254_s21 }
 0x1e9   :  { %14 = sbr.rel (!%p12_p8) target bundleno = 2 (0x2), region = 84 }

</bundles_post_ra>
